<compile_context>
chip_gen: v5e
topology: v5e:2x2
jax: 0.10.0
libtpu: 0.0.40
codegen_flags: <defaults>
</compile_context>

<pallas_src>
import functools

import jax
import jax.numpy as jnp
import numpy as np
from jax.experimental import pallas as pl
from jax.experimental.pallas import tpu as pltpu

OPS = ['none', 'skip_connect', 'nor_conv_1x1', 'nor_conv_3x3', 'avg_pool_3x3']
ARCH = [[0], [0, 1], [0, 1, 2]]  # '|none~0|+|none~0|skip_connect~1|+|none~0|skip_connect~1|nor_conv_1x1~2|'

_VMEM_FULL = pl.BlockSpec(memory_space=pltpu.MemorySpace.VMEM)


# ----------------------------------------------------------------------------
# Shared per-sample forward (works on Refs inside the kernel and on jnp arrays
# for the pure-JAX reference: both support `[i]` / `[...]` indexing).
# ----------------------------------------------------------------------------
def _mm(a, b):
    return jnp.dot(a, b, preferred_element_type=jnp.float32)


def _forward_one(p, v, arch):
    """Forward for one sample. `v`: (H, W*Cin) f32 in lane-dense layout."""

    def conv_bn(x, q, relu=False):
        # (optional ReLU) -> KxK 'same' conv (padding/stride folded into matrices) -> BN affine
        if relu:
            x = jnp.maximum(x, 0.0)
        xb = x.astype(jnp.bfloat16)
        acc = None
        for i in range(q['taps'].shape[0]):
            rows = xb if q['rowsel'] is None else _mm(q['rowsel'][i], xb).astype(jnp.bfloat16)
            t = _mm(rows, q['taps'][i])
            acc = t if acc is None else acc + t
        return acc * q['scale'][...] + q['bias'][...]

    def avg_pool(x, q):
        # AvgPool2d(3, stride=1, padding=1, count_include_pad=False), separable
        xb = x.astype(jnp.bfloat16)
        rs = _mm(q['rowmat'][...], xb).astype(jnp.bfloat16)
        return _mm(rs, q['colmat'][...]) * q['inv'][...]

    def cell(x, cp):
        nodes = [x]
        for node_idx, edges in enumerate(arch):
            acc = None
            for edge_idx, op_idx in enumerate(edges):
                src = nodes[edge_idx]
                q = cp[node_idx][edge_idx]
                if op_idx == 0:            # none
                    y = None
                elif op_idx == 1:          # skip_connect
                    y = src
                elif op_idx in (2, 3):     # nor_conv_1x1 / nor_conv_3x3
                    y = conv_bn(src, q, relu=True)
                else:                      # avg_pool_3x3
                    y = avg_pool(src, q)
                if y is not None:
                    acc = y if acc is None else acc + y
            nodes.append(acc if acc is not None else jnp.zeros_like(x))
        return nodes[-1]

    def reduction(x, q):
        # NB201 ResNetBasicblock (stride 2)
        y = conv_bn(x, q['conv_a'], relu=True)
        y = conv_bn(y, q['conv_b'], relu=True)
        xb = x.astype(jnp.bfloat16)
        rows = _mm(q['pairsel'][...], xb).astype(jnp.bfloat16)   # AvgPool2x2 row pairing
        return y + _mm(rows, q['short'][...])                    # 0.25 * Conv1x1 folded in

    def interp(x, q):
        # F.interpolate(mode='nearest') as row / column-block selection matmuls
        if q is None:
            return x
        xb = x.astype(jnp.bfloat16)
        r = _mm(q['rowsel'][...], xb).astype(jnp.bfloat16)
        return _mm(r, q['colsel'][...])

    def head(x, q):
        # Conv1x1(BatchNorm(nearest_interp(x))) folded into one matmul + bias
        xb = x.astype(jnp.bfloat16)
        if q['rowsel'] is not None:
            xb = _mm(q['rowsel'][...], xb).astype(jnp.bfloat16)
        return _mm(xb, q['mat'][...]) + q['bias'][...]

    v = conv_bn(v, p['stem'])                    # stem: Conv3x3 + BN (no ReLU)
    for cp in p['stack1']:
        v = cell(v, cp)
    o0 = head(v, p['head0'])
    v = reduction(v, p['red1'])
    for cp in p['stack2']:
        v = cell(v, cp)
    o1 = head(v, p['head1'])
    v = reduction(v, p['red2'])
    v = interp(v, p['interp3'])                  # BEFORE stack3, as in the PyTorch forward
    for cp in p['stack3']:
        v = cell(v, cp)
    o2 = head(v, p['head2'])
    return o0, o1, o2


# ----------------------------------------------------------------------------
# Fused forward: one pallas_call for the whole network
# ----------------------------------------------------------------------------
def _nb201_forward(params, x_nchw, *, arch, output_size, out_channels):
    n, cin, h, w = x_nchw.shape
    S = output_size
    # NCHW -> lane-dense (N, H, W*Cin)
    x = jnp.transpose(x_nchw, (0, 2, 3, 1)).reshape(n, h, w * cin).astype(jnp.float32)
    flat, treedef = jax.tree_util.tree_flatten(params)
    n_params = len(flat)

    def kernel(*refs):
        p = jax.tree_util.tree_unflatten(treedef, refs[1:1 + n_params])
        o0_ref, o1_ref, o2_ref = refs[1 + n_params:]
        o0, o1, o2 = _forward_one(p, refs[0][0], arch)
        o0_ref[0] = o0
        o1_ref[0] = o1
        o2_ref[0] = o2

    out_shape = tuple(jax.ShapeDtypeStruct((n, S, S * c), jnp.float32) for c in out_channels)
    out_specs = tuple(pl.BlockSpec((1, S, S * c), lambda b: (b, 0, 0)) for c in out_channels)
    outs = pl.pallas_call(
        kernel,
        grid=(n,),
        out_shape=out_shape,
        in_specs=[pl.BlockSpec((1, h, w * cin), lambda b: (b, 0, 0))] + [_VMEM_FULL] * n_params,
        out_specs=out_specs,
        compiler_params=pltpu.CompilerParams(dimension_semantics=("parallel",)),
    )(x, *flat)

    res = []
    for o, c in zip(outs, out_channels):
        res.append(jnp.transpose(o.reshape(n, S, S, c), (0, 3, 1, 2)))
    return res


# ----------------------------------------------------------------------------
# Host-side expansion of raw weights into lane-dense banded/selection matrices
# ----------------------------------------------------------------------------
def _expand_conv_bn(raw, H, W, stride):
    K, s, b = raw['K'], raw['s'], raw['b']                 # K: (k, k, Cin, Cout)
    k, _, Cin, Cout = K.shape
    pd = (k - 1) // 2
    Ho = (H + 2 * pd - k) // stride + 1
    Wo = (W + 2 * pd - k) // stride + 1
    taps = np.zeros((k, W * Cin, Wo * Cout), np.float32)   # banded: W padding + stride folded
    for di in range(k):
        for wo in range(Wo):
            for dj in range(k):
                wi = wo * stride + dj - pd
                if 0 <= wi < W:
                    taps[di, wi * Cin:(wi + 1) * Cin, wo * Cout:(wo + 1) * Cout] = K[di, dj]
    if k == 1 and stride == 1:
        rowsel = None
    else:
        rs = np.zeros((k, Ho, H), np.float32)              # row selection: H padding + stride
        for di in range(k):
            for ho in range(Ho):
                hi = ho * stride + di - pd
                if 0 <= hi < H:
                    rs[di, ho, hi] = 1.0
        rowsel = jnp.asarray(rs, jnp.bfloat16)
    q = dict(rowsel=rowsel,
             taps=jnp.asarray(taps, jnp.bfloat16),
             scale=jnp.asarray(np.tile(s, Wo)[None, :], jnp.float32),
             bias=jnp.asarray(np.tile(b, Wo)[None, :], jnp.float32))
    return q, (Ho, Wo, Cout)


def _expand_pool(H, W, C):
    rowmat = np.zeros((H, H), np.float32)
    rowcnt = np.zeros(H, np.float32)
    for i in range(H):
        for d in (-1, 0, 1):
            if 0 <= i + d < H:
                rowmat[i, i + d] = 1.0
                rowcnt[i] += 1.0
    colmat = np.zeros((W * C, W * C), np.float32)
    colcnt = np.zeros(W, np.float32)
    for w in range(W):
        for d in (-1, 0, 1):
            ws = w + d
            if 0 <= ws < W:
                colcnt[w] += 1.0
                for c in range(C):
                    colmat[ws * C + c, w * C + c] = 1.0
    inv = 1.0 / (rowcnt[:, None] * np.repeat(colcnt, C)[None, :])
    return dict(rowmat=jnp.asarray(rowmat, jnp.bfloat16),
                colmat=jnp.asarray(colmat, jnp.bfloat16),
                inv=jnp.asarray(inv, jnp.float32))


def _expand_reduction(raw, H, W):
    qa, (H2, W2, Cout) = _expand_conv_bn(raw['conv_a'], H, W, 2)
    qb, _ = _expand_conv_bn(raw['conv_b'], H2, W2, 1)
    Wd = raw['down']                                        # (Cin, Cout), 1x1 conv, no bias
    Cin = Wd.shape[0]
    Hp, Wp = H // 2, W // 2
    pairsel = np.zeros((Hp, H), np.float32)
    for ho in range(Hp):
        pairsel[ho, 2 * ho] = 1.0
        pairsel[ho, 2 * ho + 1] = 1.0
    short = np.zeros((W * Cin, Wp * Cout), np.float32)      # AvgPool2x2 (W dir) + Conv1x1
    for wo in range(Wp):
        for bb in (0, 1):
            wi = 2 * wo + bb
            short[wi * Cin:(wi + 1) * Cin, wo * Cout:(wo + 1) * Cout] = 0.25 * Wd
    q = dict(conv_a=qa, conv_b=qb,
             pairsel=jnp.asarray(pairsel, jnp.bfloat16),
             short=jnp.asarray(short, jnp.bfloat16))
    return q, (H2, W2, Cout)


def _expand_head(raw, H, W, Cin, S):
    # out = Conv1x1(BatchNorm(nearest_interp(x, (S,S)))) folded into one matmul + bias
    s, b, Wc, cb = raw['s'], raw['b'], raw['Wc'], raw['cb']  # Wc: (Cin, L), cb: (L,)
    L = Wc.shape[1]
    if H == S:
        rowsel = None
    else:
        R = np.zeros((S, H), np.float32)
        for i in range(S):
            R[i, (i * H) // S] = 1.0                        # nearest: src = floor(dst*in/out)
        rowsel = jnp.asarray(R, jnp.bfloat16)
    mat = np.zeros((W * Cin, S * L), np.float32)
    fold = s[:, None] * Wc
    for j in range(S):
        ws = (j * W) // S
        mat[ws * Cin:(ws + 1) * Cin, j * L:(j + 1) * L] = fold
    bias = np.tile(b @ Wc + cb, S)[None, :]
    return dict(rowsel=rowsel,
                mat=jnp.asarray(mat, jnp.bfloat16),
                bias=jnp.asarray(bias, jnp.float32))


def _expand_interp(H, W, C, S):
    # standalone nearest interp (used before stack3); handles up- and down-sampling
    if H == S and W == S:
        return None
    R = np.zeros((S, H), np.float32)
    for i in range(S):
        R[i, (i * H) // S] = 1.0
    colsel = np.zeros((W * C, S * C), np.float32)
    for j in range(S):
        ws = (j * W) // S
        for c in range(C):
            colsel[ws * C + c, j * C + c] = 1.0
    return dict(rowsel=jnp.asarray(R, jnp.bfloat16),
                colsel=jnp.asarray(colsel, jnp.bfloat16))


# ----------------------------------------------------------------------------
# Wrapper (mirrors NB201Wrapper.forward)
# ----------------------------------------------------------------------------
class NB201WrapperPallas:
    def __init__(self, arch_config, init_channels, last_channels, output_size,
                 num_cells=2, in_channels=3, seed=0):
        self.arch = [list(e) for e in arch_config]
        self.C0 = int(init_channels)
        self.last = [int(c) for c in last_channels]
        self.S = int(output_size)
        self.num_cells = int(num_cells)
        self.Cin = int(in_channels)
        self._raw = self._init_raw(np.random.default_rng(seed))
        self._built = {}

    # deterministic synthetic parameters (spatial-size agnostic, numpy)
    def _init_raw(self, rng):
        def bn(c):
            gamma = 1.0 + 0.1 * rng.standard_normal(c)
            beta = 0.1 * rng.standard_normal(c)
            mean = 0.1 * rng.standard_normal(c)
            var = 1.0 + 0.1 * rng.random(c)
            s = (gamma / np.sqrt(var + 1e-5)).astype(np.float32)
            return s, (beta - mean * s).astype(np.float32)

        def conv_bn(k, ci, co):
            s, b = bn(co)
            return dict(K=(0.1 * rng.standard_normal((k, k, ci, co))).astype(np.float32),
                        s=s, b=b)

        def cell(c):
            out = []
            for edges in self.arch:
                node = []
                for op in edges:
                    if op == 2:
                        node.append(conv_bn(1, c, c))
                    elif op == 3:
                        node.append(conv_bn(3, c, c))
                    else:
                        node.append(None)      # none / skip_connect / avg_pool_3x3
                out.append(node)
            return out

        def red(ci, co):
            return dict(conv_a=conv_bn(3, ci, co), conv_b=conv_bn(3, co, co),
                        down=(0.1 * rng.standard_normal((ci, co))).astype(np.float32))

        def head(ci, L):
            s, b = bn(ci)
            return dict(s=s, b=b,
                        Wc=(0.1 * rng.standard_normal((ci, L))).astype(np.float32),
                        cb=(0.1 * rng.standard_normal(L)).astype(np.float32))

        C = self.C0
        return dict(
            stem=conv_bn(3, self.Cin, C),
            stack1=[cell(C) for _ in range(self.num_cells)],
            red1=red(C, 2 * C),
            stack2=[cell(2 * C) for _ in range(self.num_cells)],
            red2=red(2 * C, 4 * C),
            stack3=[cell(4 * C) for _ in range(self.num_cells)],
            head0=head(C, self.last[0]),
            head1=head(2 * C, self.last[1]),
            head2=head(4 * C, self.last[2]),
        )

    def _expand_cell(self, cellraw, H, W, C):
        out = []
        for node_raw, edges in zip(cellraw, self.arch):
            node = []
            for edge_raw, op in zip(node_raw, edges):
                if op in (2, 3):
                    node.append(_expand_conv_bn(edge_raw, H, W, 1)[0])
                elif op == 4:
                    node.append(_expand_pool(H, W, C))
                else:
                    node.append(None)
            out.append(node)
        return out

    def _build(self, H, W):
        C, S = self.C0, self.S
        raw = self._raw
        p = {}
        p['stem'], _ = _expand_conv_bn(raw['stem'], H, W, 1)
        p['stack1'] = [self._expand_cell(c, H, W, C) for c in raw['stack1']]
        p['head0'] = _expand_head(raw['head0'], H, W, C, S)
        p['red1'], (H2, W2, _) = _expand_reduction(raw['red1'], H, W)
        p['stack2'] = [self._expand_cell(c, H2, W2, 2 * C) for c in raw['stack2']]
        p['head1'] = _expand_head(raw['head1'], H2, W2, 2 * C, S)
        p['red2'], (H3, W3, _) = _expand_reduction(raw['red2'], H2, W2)
        p['interp3'] = _expand_interp(H3, W3, 4 * C, S)
        p['stack3'] = [self._expand_cell(c, S, S, 4 * C) for c in raw['stack3']]
        p['head2'] = _expand_head(raw['head2'], S, S, 4 * C, S)
        return p

    def _get(self, h, w):
        key = (h, w)
        if key not in self._built:
            params = self._build(h, w)
            fwd = jax.jit(functools.partial(
                _nb201_forward, arch=self.arch, output_size=self.S,
                out_channels=tuple(self.last)))
            self._built[key] = (params, fwd)
        return self._built[key]

    def __call__(self, x_nchw):
        _, _, h, w = x_nchw.shape
        params, fwd = self._get(h, w)
        return fwd(params, x_nchw)

    def reference(self, x_nchw):
        """Pure-JAX (non-Pallas) reference using the same folded parameters."""
        n, cin, h, w = x_nchw.shape
        params, _ = self._get(h, w)
        xl = jnp.transpose(x_nchw, (0, 2, 3, 1)).reshape(n, h, w * cin).astype(jnp.float32)
        per = [_forward_one(params, xl[b], self.arch) for b in range(n)]
        res = []
        for idx, c in enumerate(self.last):
            o = jnp.stack([per[b][idx] for b in range(n)])
            res.append(jnp.transpose(o.reshape(n, self.S, self.S, c), (0, 3, 1, 2)))
        return res


if __name__ == "__main__":
    init_channels = 4
    last_channels = [8, 8, 8]
    output_size = 8

    model = NB201WrapperPallas(ARCH, init_channels, last_channels, output_size,
                               num_cells=2, in_channels=3, seed=0)

    # CIFAR-like 32x32 NCHW input (as in GenNAS); batch=2.
    x = jax.random.normal(jax.random.PRNGKey(0), (2, 3, 32, 32), jnp.float32)

    outs = jax.block_until_ready(model(x))

    assert outs[0].shape == (2, last_channels[0], output_size, output_size)
    assert outs[1].shape == (2, last_channels[1], output_size, output_size)
    assert outs[2].shape == (2, last_channels[2], output_size, output_size)
    assert all(bool(jnp.all(jnp.isfinite(o))) for o in outs)

    # Cross-check the Pallas kernel against the pure-JAX reference (same math).
    refs = jax.block_until_ready(model.reference(x))
    for o, r in zip(outs, refs):
        assert bool(jnp.allclose(o, r, rtol=2e-2, atol=2e-2)), \
            float(jnp.max(jnp.abs(o - r)))

    print("KERNEL_OK")
</pallas_src>

<mosaic_0001>
module attributes {stable_mosaic.version = 11 : i64} {
  func.func @kernel(%arg0: i32, %arg1: memref<1x32x96xf32, #tpu.memory_space<vmem>>, %arg2: memref<1x64xf32, #tpu.memory_space<vmem>>, %arg3: memref<128x64xbf16, #tpu.memory_space<vmem>>, %arg4: memref<8x32xbf16, #tpu.memory_space<vmem>>, %arg5: memref<1x64xf32, #tpu.memory_space<vmem>>, %arg6: memref<128x64xbf16, #tpu.memory_space<vmem>>, %arg7: memref<8x16xbf16, #tpu.memory_space<vmem>>, %arg8: memref<1x64xf32, #tpu.memory_space<vmem>>, %arg9: memref<128x64xbf16, #tpu.memory_space<vmem>>, %arg10: memref<1x128xf32, #tpu.memory_space<vmem>>, %arg11: memref<3x16x32xbf16, #tpu.memory_space<vmem>>, %arg12: memref<1x128xf32, #tpu.memory_space<vmem>>, %arg13: memref<3x128x128xbf16, #tpu.memory_space<vmem>>, %arg14: memref<1x128xf32, #tpu.memory_space<vmem>>, %arg15: memref<3x16x16xbf16, #tpu.memory_space<vmem>>, %arg16: memref<1x128xf32, #tpu.memory_space<vmem>>, %arg17: memref<3x128x128xbf16, #tpu.memory_space<vmem>>, %arg18: memref<16x32xbf16, #tpu.memory_space<vmem>>, %arg19: memref<128x128xbf16, #tpu.memory_space<vmem>>, %arg20: memref<1x128xf32, #tpu.memory_space<vmem>>, %arg21: memref<3x8x16xbf16, #tpu.memory_space<vmem>>, %arg22: memref<1x128xf32, #tpu.memory_space<vmem>>, %arg23: memref<3x128x128xbf16, #tpu.memory_space<vmem>>, %arg24: memref<1x128xf32, #tpu.memory_space<vmem>>, %arg25: memref<3x8x8xbf16, #tpu.memory_space<vmem>>, %arg26: memref<1x128xf32, #tpu.memory_space<vmem>>, %arg27: memref<3x128x128xbf16, #tpu.memory_space<vmem>>, %arg28: memref<8x16xbf16, #tpu.memory_space<vmem>>, %arg29: memref<128x128xbf16, #tpu.memory_space<vmem>>, %arg30: memref<1x128xf32, #tpu.memory_space<vmem>>, %arg31: memref<1x128xf32, #tpu.memory_space<vmem>>, %arg32: memref<1x128x128xbf16, #tpu.memory_space<vmem>>, %arg33: memref<1x128xf32, #tpu.memory_space<vmem>>, %arg34: memref<1x128xf32, #tpu.memory_space<vmem>>, %arg35: memref<1x128x128xbf16, #tpu.memory_space<vmem>>, %arg36: memref<1x128xf32, #tpu.memory_space<vmem>>, %arg37: memref<1x128xf32, #tpu.memory_space<vmem>>, %arg38: memref<1x128x128xbf16, #tpu.memory_space<vmem>>, %arg39: memref<1x128xf32, #tpu.memory_space<vmem>>, %arg40: memref<1x128xf32, #tpu.memory_space<vmem>>, %arg41: memref<1x128x128xbf16, #tpu.memory_space<vmem>>, %arg42: memref<1x128xf32, #tpu.memory_space<vmem>>, %arg43: memref<1x128xf32, #tpu.memory_space<vmem>>, %arg44: memref<1x128x128xbf16, #tpu.memory_space<vmem>>, %arg45: memref<1x128xf32, #tpu.memory_space<vmem>>, %arg46: memref<1x128xf32, #tpu.memory_space<vmem>>, %arg47: memref<1x128x128xbf16, #tpu.memory_space<vmem>>, %arg48: memref<1x128xf32, #tpu.memory_space<vmem>>, %arg49: memref<3x32x32xbf16, #tpu.memory_space<vmem>>, %arg50: memref<1x128xf32, #tpu.memory_space<vmem>>, %arg51: memref<3x96x128xbf16, #tpu.memory_space<vmem>>, %arg52: memref<1x8x64xf32, #tpu.memory_space<vmem>>, %arg53: memref<1x8x64xf32, #tpu.memory_space<vmem>>, %arg54: memref<1x8x64xf32, #tpu.memory_space<vmem>>) attributes {dimension_semantics = [#tpu.dimension_semantics<parallel>], iteration_bounds = array<i64: 2>, scalar_prefetch = 0 : i64, scratch_operands = 0 : i64, tpu.core_type = #tpu.core_type<tc>, window_params = [{transform_indices = @transform_0, window_bounds = array<i64: 1, 32, 96>}, {pipeline_mode = #tpu.pipeline_mode<synchronous>, transform_indices = @transform_1, window_bounds = array<i64: 1, 64>}, {pipeline_mode = #tpu.pipeline_mode<synchronous>, transform_indices = @transform_2, window_bounds = array<i64: 128, 64>}, {pipeline_mode = #tpu.pipeline_mode<synchronous>, transform_indices = @transform_3, window_bounds = array<i64: 8, 32>}, {pipeline_mode = #tpu.pipeline_mode<synchronous>, transform_indices = @transform_4, window_bounds = array<i64: 1, 64>}, {pipeline_mode = #tpu.pipeline_mode<synchronous>, transform_indices = @transform_5, window_bounds = array<i64: 128, 64>}, {pipeline_mode = #tpu.pipeline_mode<synchronous>, transform_indices = @transform_6, window_bounds = array<i64: 8, 16>}, {pipeline_mode = #tpu.pipeline_mode<synchronous>, transform_indices = @transform_7, window_bounds = array<i64: 1, 64>}, {pipeline_mode = #tpu.pipeline_mode<synchronous>, transform_indices = @transform_8, window_bounds = array<i64: 128, 64>}, {pipeline_mode = #tpu.pipeline_mode<synchronous>, transform_indices = @transform_9, window_bounds = array<i64: 1, 128>}, {pipeline_mode = #tpu.pipeline_mode<synchronous>, transform_indices = @transform_10, window_bounds = array<i64: 3, 16, 32>}, {pipeline_mode = #tpu.pipeline_mode<synchronous>, transform_indices = @transform_11, window_bounds = array<i64: 1, 128>}, {pipeline_mode = #tpu.pipeline_mode<synchronous>, transform_indices = @transform_12, window_bounds = array<i64: 3, 128, 128>}, {pipeline_mode = #tpu.pipeline_mode<synchronous>, transform_indices = @transform_13, window_bounds = array<i64: 1, 128>}, {pipeline_mode = #tpu.pipeline_mode<synchronous>, transform_indices = @transform_14, window_bounds = array<i64: 3, 16, 16>}, {pipeline_mode = #tpu.pipeline_mode<synchronous>, transform_indices = @transform_15, window_bounds = array<i64: 1, 128>}, {pipeline_mode = #tpu.pipeline_mode<synchronous>, transform_indices = @transform_16, window_bounds = array<i64: 3, 128, 128>}, {pipeline_mode = #tpu.pipeline_mode<synchronous>, transform_indices = @transform_17, window_bounds = array<i64: 16, 32>}, {pipeline_mode = #tpu.pipeline_mode<synchronous>, transform_indices = @transform_18, window_bounds = array<i64: 128, 128>}, {pipeline_mode = #tpu.pipeline_mode<synchronous>, transform_indices = @transform_19, window_bounds = array<i64: 1, 128>}, {pipeline_mode = #tpu.pipeline_mode<synchronous>, transform_indices = @transform_20, window_bounds = array<i64: 3, 8, 16>}, {pipeline_mode = #tpu.pipeline_mode<synchronous>, transform_indices = @transform_21, window_bounds = array<i64: 1, 128>}, {pipeline_mode = #tpu.pipeline_mode<synchronous>, transform_indices = @transform_22, window_bounds = array<i64: 3, 128, 128>}, {pipeline_mode = #tpu.pipeline_mode<synchronous>, transform_indices = @transform_23, window_bounds = array<i64: 1, 128>}, {pipeline_mode = #tpu.pipeline_mode<synchronous>, transform_indices = @transform_24, window_bounds = array<i64: 3, 8, 8>}, {pipeline_mode = #tpu.pipeline_mode<synchronous>, transform_indices = @transform_25, window_bounds = array<i64: 1, 128>}, {pipeline_mode = #tpu.pipeline_mode<synchronous>, transform_indices = @transform_26, window_bounds = array<i64: 3, 128, 128>}, {pipeline_mode = #tpu.pipeline_mode<synchronous>, transform_indices = @transform_27, window_bounds = array<i64: 8, 16>}, {pipeline_mode = #tpu.pipeline_mode<synchronous>, transform_indices = @transform_28, window_bounds = array<i64: 128, 128>}, {pipeline_mode = #tpu.pipeline_mode<synchronous>, transform_indices = @transform_29, window_bounds = array<i64: 1, 128>}, {pipeline_mode = #tpu.pipeline_mode<synchronous>, transform_indices = @transform_30, window_bounds = array<i64: 1, 128>}, {pipeline_mode = #tpu.pipeline_mode<synchronous>, transform_indices = @transform_31, window_bounds = array<i64: 1, 128, 128>}, {pipeline_mode = #tpu.pipeline_mode<synchronous>, transform_indices = @transform_32, window_bounds = array<i64: 1, 128>}, {pipeline_mode = #tpu.pipeline_mode<synchronous>, transform_indices = @transform_33, window_bounds = array<i64: 1, 128>}, {pipeline_mode = #tpu.pipeline_mode<synchronous>, transform_indices = @transform_34, window_bounds = array<i64: 1, 128, 128>}, {pipeline_mode = #tpu.pipeline_mode<synchronous>, transform_indices = @transform_35, window_bounds = array<i64: 1, 128>}, {pipeline_mode = #tpu.pipeline_mode<synchronous>, transform_indices = @transform_36, window_bounds = array<i64: 1, 128>}, {pipeline_mode = #tpu.pipeline_mode<synchronous>, transform_indices = @transform_37, window_bounds = array<i64: 1, 128, 128>}, {pipeline_mode = #tpu.pipeline_mode<synchronous>, transform_indices = @transform_38, window_bounds = array<i64: 1, 128>}, {pipeline_mode = #tpu.pipeline_mode<synchronous>, transform_indices = @transform_39, window_bounds = array<i64: 1, 128>}, {pipeline_mode = #tpu.pipeline_mode<synchronous>, transform_indices = @transform_40, window_bounds = array<i64: 1, 128, 128>}, {pipeline_mode = #tpu.pipeline_mode<synchronous>, transform_indices = @transform_41, window_bounds = array<i64: 1, 128>}, {pipeline_mode = #tpu.pipeline_mode<synchronous>, transform_indices = @transform_42, window_bounds = array<i64: 1, 128>}, {pipeline_mode = #tpu.pipeline_mode<synchronous>, transform_indices = @transform_43, window_bounds = array<i64: 1, 128, 128>}, {pipeline_mode = #tpu.pipeline_mode<synchronous>, transform_indices = @transform_44, window_bounds = array<i64: 1, 128>}, {pipeline_mode = #tpu.pipeline_mode<synchronous>, transform_indices = @transform_45, window_bounds = array<i64: 1, 128>}, {pipeline_mode = #tpu.pipeline_mode<synchronous>, transform_indices = @transform_46, window_bounds = array<i64: 1, 128, 128>}, {pipeline_mode = #tpu.pipeline_mode<synchronous>, transform_indices = @transform_47, window_bounds = array<i64: 1, 128>}, {pipeline_mode = #tpu.pipeline_mode<synchronous>, transform_indices = @transform_48, window_bounds = array<i64: 3, 32, 32>}, {pipeline_mode = #tpu.pipeline_mode<synchronous>, transform_indices = @transform_49, window_bounds = array<i64: 1, 128>}, {pipeline_mode = #tpu.pipeline_mode<synchronous>, transform_indices = @transform_50, window_bounds = array<i64: 3, 96, 128>}, {transform_indices = @transform_51, window_bounds = array<i64: 1, 8, 64>}, {transform_indices = @transform_52, window_bounds = array<i64: 1, 8, 64>}, {transform_indices = @transform_53, window_bounds = array<i64: 1, 8, 64>}]} {
    %cst = arith.constant 0.000000e+00 : f32
    %0 = vector.broadcast %cst : f32 to vector<32x128xf32>
    %cst_0 = arith.constant 0.000000e+00 : f32
    %1 = vector.broadcast %cst_0 : f32 to vector<32x128xf32>
    %2 = arith.maximumf %0, %1 : vector<32x128xf32>
    %3 = arith.truncf %2 : vector<32x128xf32> to vector<32x128xbf16>
    %c0 = arith.constant 0 : index
    %c0_1 = arith.constant 0 : index
    %c0_2 = arith.constant 0 : index
    %4 = vector.load %arg35[%c0, %c0_1, %c0_2] : memref<1x128x128xbf16, #tpu.memory_space<vmem>>, vector<1x128x128xbf16>
    %5 = vector.shape_cast %4 : vector<1x128x128xbf16> to vector<128x128xbf16>
    %cst_3 = arith.constant dense<0.000000e+00> : vector<32x128xf32>
    %6 = tpu.matmul %3, %5, %cst_3 {dimension_numbers = #tpu.dot_dimension_numbers<[1], [0], [0], [1], [0, 0, 1, 1], [], []>} : vector<32x128xbf16>, vector<128x128xbf16>, vector<32x128xf32> -> vector<32x128xf32>
    %c0_4 = arith.constant 0 : index
    %c0_5 = arith.constant 0 : index
    %7 = vector.load %arg34[%c0_4, %c0_5] : memref<1x128xf32, #tpu.memory_space<vmem>>, vector<1x128xf32>
    %8 = vector.broadcast %7 : vector<1x128xf32> to vector<32x128xf32>
    %9 = arith.mulf %6, %8 : vector<32x128xf32>
    %c0_6 = arith.constant 0 : index
    %c0_7 = arith.constant 0 : index
    %10 = vector.load %arg33[%c0_6, %c0_7] : memref<1x128xf32, #tpu.memory_space<vmem>>, vector<1x128xf32>
    %11 = vector.broadcast %10 : vector<1x128xf32> to vector<32x128xf32>
    %12 = arith.addf %9, %11 : vector<32x128xf32>
    %13 = arith.addf %0, %12 : vector<32x128xf32>
    %14 = arith.truncf %13 : vector<32x128xf32> to vector<32x128xbf16>
    %c0_8 = arith.constant 0 : index
    %c0_9 = arith.constant 0 : index
    %15 = vector.load %arg4[%c0_8, %c0_9] : memref<8x32xbf16, #tpu.memory_space<vmem>>, vector<8x32xbf16>
    %cst_10 = arith.constant dense<0.000000e+00> : vector<8x128xf32>
    %16 = tpu.matmul %15, %14, %cst_10 {dimension_numbers = #tpu.dot_dimension_numbers<[1], [0], [0], [1], [0, 0, 1, 1], [], []>} : vector<8x32xbf16>, vector<32x128xbf16>, vector<8x128xf32> -> vector<8x128xf32>
    %17 = arith.truncf %16 : vector<8x128xf32> to vector<8x128xbf16>
    %c0_11 = arith.constant 0 : index
    %c0_12 = arith.constant 0 : index
    %18 = vector.load %arg3[%c0_11, %c0_12] : memref<128x64xbf16, #tpu.memory_space<vmem>>, vector<128x64xbf16>
    %cst_13 = arith.constant dense<0.000000e+00> : vector<8x64xf32>
    %19 = tpu.matmul %17, %18, %cst_13 {dimension_numbers = #tpu.dot_dimension_numbers<[1], [0], [0], [1], [0, 0, 1, 1], [], []>} : vector<8x128xbf16>, vector<128x64xbf16>, vector<8x64xf32> -> vector<8x64xf32>
    %c0_14 = arith.constant 0 : index
    %c0_15 = arith.constant 0 : index
    %20 = vector.load %arg2[%c0_14, %c0_15] : memref<1x64xf32, #tpu.memory_space<vmem>>, vector<1x64xf32>
    %21 = vector.broadcast %20 : vector<1x64xf32> to vector<8x64xf32>
    %22 = arith.addf %19, %21 : vector<8x64xf32>
    %cst_16 = arith.constant 0.000000e+00 : f32
    %23 = vector.broadcast %cst_16 : f32 to vector<16x128xf32>
    %cst_17 = arith.constant 0.000000e+00 : f32
    %24 = vector.broadcast %cst_17 : f32 to vector<16x128xf32>
    %25 = arith.maximumf %23, %24 : vector<16x128xf32>
    %26 = arith.truncf %25 : vector<16x128xf32> to vector<16x128xbf16>
    %c0_18 = arith.constant 0 : index
    %c0_19 = arith.constant 0 : index
    %c0_20 = arith.constant 0 : index
    %27 = vector.load %arg41[%c0_18, %c0_19, %c0_20] : memref<1x128x128xbf16, #tpu.memory_space<vmem>>, vector<1x128x128xbf16>
    %28 = vector.shape_cast %27 : vector<1x128x128xbf16> to vector<128x128xbf16>
    %cst_21 = arith.constant dense<0.000000e+00> : vector<16x128xf32>
    %29 = tpu.matmul %26, %28, %cst_21 {dimension_numbers = #tpu.dot_dimension_numbers<[1], [0], [0], [1], [0, 0, 1, 1], [], []>} : vector<16x128xbf16>, vector<128x128xbf16>, vector<16x128xf32> -> vector<16x128xf32>
    %c0_22 = arith.constant 0 : index
    %c0_23 = arith.constant 0 : index
    %30 = vector.load %arg40[%c0_22, %c0_23] : memref<1x128xf32, #tpu.memory_space<vmem>>, vector<1x128xf32>
    %31 = vector.broadcast %30 : vector<1x128xf32> to vector<16x128xf32>
    %32 = arith.mulf %29, %31 : vector<16x128xf32>
    %c0_24 = arith.constant 0 : index
    %c0_25 = arith.constant 0 : index
    %33 = vector.load %arg39[%c0_24, %c0_25] : memref<1x128xf32, #tpu.memory_space<vmem>>, vector<1x128xf32>
    %34 = vector.broadcast %33 : vector<1x128xf32> to vector<16x128xf32>
    %35 = arith.addf %32, %34 : vector<16x128xf32>
    %36 = arith.addf %23, %35 : vector<16x128xf32>
    %37 = arith.truncf %36 : vector<16x128xf32> to vector<16x128xbf16>
    %c0_26 = arith.constant 0 : index
    %c0_27 = arith.constant 0 : index
    %38 = vector.load %arg7[%c0_26, %c0_27] : memref<8x16xbf16, #tpu.memory_space<vmem>>, vector<8x16xbf16>
    %cst_28 = arith.constant dense<0.000000e+00> : vector<8x128xf32>
    %39 = tpu.matmul %38, %37, %cst_28 {dimension_numbers = #tpu.dot_dimension_numbers<[1], [0], [0], [1], [0, 0, 1, 1], [], []>} : vector<8x16xbf16>, vector<16x128xbf16>, vector<8x128xf32> -> vector<8x128xf32>
    %40 = arith.truncf %39 : vector<8x128xf32> to vector<8x128xbf16>
    %c0_29 = arith.constant 0 : index
    %c0_30 = arith.constant 0 : index
    %41 = vector.load %arg6[%c0_29, %c0_30] : memref<128x64xbf16, #tpu.memory_space<vmem>>, vector<128x64xbf16>
    %cst_31 = arith.constant dense<0.000000e+00> : vector<8x64xf32>
    %42 = tpu.matmul %40, %41, %cst_31 {dimension_numbers = #tpu.dot_dimension_numbers<[1], [0], [0], [1], [0, 0, 1, 1], [], []>} : vector<8x128xbf16>, vector<128x64xbf16>, vector<8x64xf32> -> vector<8x64xf32>
    %c0_32 = arith.constant 0 : index
    %c0_33 = arith.constant 0 : index
    %43 = vector.load %arg5[%c0_32, %c0_33] : memref<1x64xf32, #tpu.memory_space<vmem>>, vector<1x64xf32>
    %44 = vector.broadcast %43 : vector<1x64xf32> to vector<8x64xf32>
    %45 = arith.addf %42, %44 : vector<8x64xf32>
    %cst_34 = arith.constant 0.000000e+00 : f32
    %46 = vector.broadcast %cst_34 : f32 to vector<8x128xf32>
    %cst_35 = arith.constant 0.000000e+00 : f32
    %47 = vector.broadcast %cst_35 : f32 to vector<8x128xf32>
    %48 = arith.maximumf %46, %47 : vector<8x128xf32>
    %49 = arith.truncf %48 : vector<8x128xf32> to vector<8x128xbf16>
    %c0_36 = arith.constant 0 : index
    %c0_37 = arith.constant 0 : index
    %c0_38 = arith.constant 0 : index
    %50 = vector.load %arg47[%c0_36, %c0_37, %c0_38] : memref<1x128x128xbf16, #tpu.memory_space<vmem>>, vector<1x128x128xbf16>
    %51 = vector.shape_cast %50 : vector<1x128x128xbf16> to vector<128x128xbf16>
    %cst_39 = arith.constant dense<0.000000e+00> : vector<8x128xf32>
    %52 = tpu.matmul %49, %51, %cst_39 {dimension_numbers = #tpu.dot_dimension_numbers<[1], [0], [0], [1], [0, 0, 1, 1], [], []>} : vector<8x128xbf16>, vector<128x128xbf16>, vector<8x128xf32> -> vector<8x128xf32>
    %c0_40 = arith.constant 0 : index
    %c0_41 = arith.constant 0 : index
    %53 = vector.load %arg46[%c0_40, %c0_41] : memref<1x128xf32, #tpu.memory_space<vmem>>, vector<1x128xf32>
    %54 = vector.broadcast %53 : vector<1x128xf32> to vector<8x128xf32>
    %55 = arith.mulf %52, %54 : vector<8x128xf32>
    %c0_42 = arith.constant 0 : index
    %c0_43 = arith.constant 0 : index
    %56 = vector.load %arg45[%c0_42, %c0_43] : memref<1x128xf32, #tpu.memory_space<vmem>>, vector<1x128xf32>
    %57 = vector.broadcast %56 : vector<1x128xf32> to vector<8x128xf32>
    %58 = arith.addf %55, %57 : vector<8x128xf32>
    %59 = arith.addf %46, %58 : vector<8x128xf32>
    %60 = arith.truncf %59 : vector<8x128xf32> to vector<8x128xbf16>
    %c0_44 = arith.constant 0 : index
    %c0_45 = arith.constant 0 : index
    %61 = vector.load %arg9[%c0_44, %c0_45] : memref<128x64xbf16, #tpu.memory_space<vmem>>, vector<128x64xbf16>
    %cst_46 = arith.constant dense<0.000000e+00> : vector<8x64xf32>
    %62 = tpu.matmul %60, %61, %cst_46 {dimension_numbers = #tpu.dot_dimension_numbers<[1], [0], [0], [1], [0, 0, 1, 1], [], []>} : vector<8x128xbf16>, vector<128x64xbf16>, vector<8x64xf32> -> vector<8x64xf32>
    %c0_47 = arith.constant 0 : index
    %c0_48 = arith.constant 0 : index
    %63 = vector.load %arg8[%c0_47, %c0_48] : memref<1x64xf32, #tpu.memory_space<vmem>>, vector<1x64xf32>
    %64 = vector.broadcast %63 : vector<1x64xf32> to vector<8x64xf32>
    %65 = arith.addf %62, %64 : vector<8x64xf32>
    %c0_49 = arith.constant 0 : index
    %c0_50 = arith.constant 0 : index
    %c0_51 = arith.constant 0 : index
    %66 = vector.load %arg52[%c0_49, %c0_50, %c0_51] : memref<1x8x64xf32, #tpu.memory_space<vmem>>, vector<1x8x64xf32>
    %67 = vector.shape_cast %66 : vector<1x8x64xf32> to vector<8x64xf32>
    %68 = vector.shape_cast %22 : vector<8x64xf32> to vector<1x8x64xf32>
    tpu.vector_store %arg52[%c0_49, %c0_50, %c0_51], %68 {strides = array<i32>} : memref<1x8x64xf32, #tpu.memory_space<vmem>>, vector<1x8x64xf32>,
    %c0_52 = arith.constant 0 : index
    %c0_53 = arith.constant 0 : index
    %c0_54 = arith.constant 0 : index
    %69 = vector.load %arg53[%c0_52, %c0_53, %c0_54] : memref<1x8x64xf32, #tpu.memory_space<vmem>>, vector<1x8x64xf32>
    %70 = vector.shape_cast %69 : vector<1x8x64xf32> to vector<8x64xf32>
    %71 = vector.shape_cast %45 : vector<8x64xf32> to vector<1x8x64xf32>
    tpu.vector_store %arg53[%c0_52, %c0_53, %c0_54], %71 {strides = array<i32>} : memref<1x8x64xf32, #tpu.memory_space<vmem>>, vector<1x8x64xf32>,
    %c0_55 = arith.constant 0 : index
    %c0_56 = arith.constant 0 : index
    %c0_57 = arith.constant 0 : index
    %72 = vector.load %arg54[%c0_55, %c0_56, %c0_57] : memref<1x8x64xf32, #tpu.memory_space<vmem>>, vector<1x8x64xf32>
    %73 = vector.shape_cast %72 : vector<1x8x64xf32> to vector<8x64xf32>
    %74 = vector.shape_cast %65 : vector<8x64xf32> to vector<1x8x64xf32>
    tpu.vector_store %arg54[%c0_55, %c0_56, %c0_57], %74 {strides = array<i32>} : memref<1x8x64xf32, #tpu.memory_space<vmem>>, vector<1x8x64xf32>,
    return
  }
  func.func @transform_0(%arg0: i32) -> (i32, i32, i32) {
    %c0_i32 = arith.constant 0 : i32
    %c0_i32_0 = arith.constant 0 : i32
    %c0_i32_1 = arith.constant 0 : i32
    return %arg0, %c0_i32, %c0_i32_0 : i32, i32, i32
  }
  func.func @transform_1(%arg0: i32) -> (i32, i32) {
    %c0_i32 = arith.constant 0 : i32
    %c0_i32_0 = arith.constant 0 : i32
    %c0_i32_1 = arith.constant 0 : i32
    return %c0_i32, %c0_i32_0 : i32, i32
  }
  func.func @transform_2(%arg0: i32) -> (i32, i32) {
    %c0_i32 = arith.constant 0 : i32
    %c0_i32_0 = arith.constant 0 : i32
    %c0_i32_1 = arith.constant 0 : i32
    return %c0_i32, %c0_i32_0 : i32, i32
  }
  func.func @transform_3(%arg0: i32) -> (i32, i32) {
    %c0_i32 = arith.constant 0 : i32
    %c0_i32_0 = arith.constant 0 : i32
    %c0_i32_1 = arith.constant 0 : i32
    return %c0_i32, %c0_i32_0 : i32, i32
  }
  func.func @transform_4(%arg0: i32) -> (i32, i32) {
    %c0_i32 = arith.constant 0 : i32
    %c0_i32_0 = arith.constant 0 : i32
    %c0_i32_1 = arith.constant 0 : i32
    return %c0_i32, %c0_i32_0 : i32, i32
  }
  func.func @transform_5(%arg0: i32) -> (i32, i32) {
    %c0_i32 = arith.constant 0 : i32
    %c0_i32_0 = arith.constant 0 : i32
    %c0_i32_1 = arith.constant 0 : i32
    return %c0_i32, %c0_i32_0 : i32, i32
  }
  func.func @transform_6(%arg0: i32) -> (i32, i32) {
    %c0_i32 = arith.constant 0 : i32
    %c0_i32_0 = arith.constant 0 : i32
    %c0_i32_1 = arith.constant 0 : i32
    return %c0_i32, %c0_i32_0 : i32, i32
  }
  func.func @transform_7(%arg0: i32) -> (i32, i32) {
    %c0_i32 = arith.constant 0 : i32
    %c0_i32_0 = arith.constant 0 : i32
    %c0_i32_1 = arith.constant 0 : i32
    return %c0_i32, %c0_i32_0 : i32, i32
  }
  func.func @transform_8(%arg0: i32) -> (i32, i32) {
    %c0_i32 = arith.constant 0 : i32
    %c0_i32_0 = arith.constant 0 : i32
    %c0_i32_1 = arith.constant 0 : i32
    return %c0_i32, %c0_i32_0 : i32, i32
  }
  func.func @transform_9(%arg0: i32) -> (i32, i32) {
    %c0_i32 = arith.constant 0 : i32
    %c0_i32_0 = arith.constant 0 : i32
    %c0_i32_1 = arith.constant 0 : i32
    return %c0_i32, %c0_i32_0 : i32, i32
  }
  func.func @transform_10(%arg0: i32) -> (i32, i32, i32) {
    %c0_i32 = arith.constant 0 : i32
    %c0_i32_0 = arith.constant 0 : i32
    %c0_i32_1 = arith.constant 0 : i32
    %c0_i32_2 = arith.constant 0 : i32
    return %c0_i32, %c0_i32_0, %c0_i32_1 : i32, i32, i32
  }
  func.func @transform_11(%arg0: i32) -> (i32, i32) {
    %c0_i32 = arith.constant 0 : i32
    %c0_i32_0 = arith.constant 0 : i32
    %c0_i32_1 = arith.constant 0 : i32
    return %c0_i32, %c0_i32_0 : i32, i32
  }
  func.func @transform_12(%arg0: i32) -> (i32, i32, i32) {
    %c0_i32 = arith.constant 0 : i32
    %c0_i32_0 = arith.constant 0 : i32
    %c0_i32_1 = arith.constant 0 : i32
    %c0_i32_2 = arith.constant 0 : i32
    return %c0_i32, %c0_i32_0, %c0_i32_1 : i32, i32, i32
  }
  func.func @transform_13(%arg0: i32) -> (i32, i32) {
    %c0_i32 = arith.constant 0 : i32
    %c0_i32_0 = arith.constant 0 : i32
    %c0_i32_1 = arith.constant 0 : i32
    return %c0_i32, %c0_i32_0 : i32, i32
  }
  func.func @transform_14(%arg0: i32) -> (i32, i32, i32) {
    %c0_i32 = arith.constant 0 : i32
    %c0_i32_0 = arith.constant 0 : i32
    %c0_i32_1 = arith.constant 0 : i32
    %c0_i32_2 = arith.constant 0 : i32
    return %c0_i32, %c0_i32_0, %c0_i32_1 : i32, i32, i32
  }
  func.func @transform_15(%arg0: i32) -> (i32, i32) {
    %c0_i32 = arith.constant 0 : i32
    %c0_i32_0 = arith.constant 0 : i32
    %c0_i32_1 = arith.constant 0 : i32
    return %c0_i32, %c0_i32_0 : i32, i32
  }
  func.func @transform_16(%arg0: i32) -> (i32, i32, i32) {
    %c0_i32 = arith.constant 0 : i32
    %c0_i32_0 = arith.constant 0 : i32
    %c0_i32_1 = arith.constant 0 : i32
    %c0_i32_2 = arith.constant 0 : i32
    return %c0_i32, %c0_i32_0, %c0_i32_1 : i32, i32, i32
  }
  func.func @transform_17(%arg0: i32) -> (i32, i32) {
    %c0_i32 = arith.constant 0 : i32
    %c0_i32_0 = arith.constant 0 : i32
    %c0_i32_1 = arith.constant 0 : i32
    return %c0_i32, %c0_i32_0 : i32, i32
  }
  func.func @transform_18(%arg0: i32) -> (i32, i32) {
    %c0_i32 = arith.constant 0 : i32
    %c0_i32_0 = arith.constant 0 : i32
    %c0_i32_1 = arith.constant 0 : i32
    return %c0_i32, %c0_i32_0 : i32, i32
  }
  func.func @transform_19(%arg0: i32) -> (i32, i32) {
    %c0_i32 = arith.constant 0 : i32
    %c0_i32_0 = arith.constant 0 : i32
    %c0_i32_1 = arith.constant 0 : i32
    return %c0_i32, %c0_i32_0 : i32, i32
  }
  func.func @transform_20(%arg0: i32) -> (i32, i32, i32) {
    %c0_i32 = arith.constant 0 : i32
    %c0_i32_0 = arith.constant 0 : i32
    %c0_i32_1 = arith.constant 0 : i32
    %c0_i32_2 = arith.constant 0 : i32
    return %c0_i32, %c0_i32_0, %c0_i32_1 : i32, i32, i32
  }
  func.func @transform_21(%arg0: i32) -> (i32, i32) {
    %c0_i32 = arith.constant 0 : i32
    %c0_i32_0 = arith.constant 0 : i32
    %c0_i32_1 = arith.constant 0 : i32
    return %c0_i32, %c0_i32_0 : i32, i32
  }
  func.func @transform_22(%arg0: i32) -> (i32, i32, i32) {
    %c0_i32 = arith.constant 0 : i32
    %c0_i32_0 = arith.constant 0 : i32
    %c0_i32_1 = arith.constant 0 : i32
    %c0_i32_2 = arith.constant 0 : i32
    return %c0_i32, %c0_i32_0, %c0_i32_1 : i32, i32, i32
  }
  func.func @transform_23(%arg0: i32) -> (i32, i32) {
    %c0_i32 = arith.constant 0 : i32
    %c0_i32_0 = arith.constant 0 : i32
    %c0_i32_1 = arith.constant 0 : i32
    return %c0_i32, %c0_i32_0 : i32, i32
  }
  func.func @transform_24(%arg0: i32) -> (i32, i32, i32) {
    %c0_i32 = arith.constant 0 : i32
    %c0_i32_0 = arith.constant 0 : i32
    %c0_i32_1 = arith.constant 0 : i32
    %c0_i32_2 = arith.constant 0 : i32
    return %c0_i32, %c0_i32_0, %c0_i32_1 : i32, i32, i32
  }
  func.func @transform_25(%arg0: i32) -> (i32, i32) {
    %c0_i32 = arith.constant 0 : i32
    %c0_i32_0 = arith.constant 0 : i32
    %c0_i32_1 = arith.constant 0 : i32
    return %c0_i32, %c0_i32_0 : i32, i32
  }
  func.func @transform_26(%arg0: i32) -> (i32, i32, i32) {
    %c0_i32 = arith.constant 0 : i32
    %c0_i32_0 = arith.constant 0 : i32
    %c0_i32_1 = arith.constant 0 : i32
    %c0_i32_2 = arith.constant 0 : i32
    return %c0_i32, %c0_i32_0, %c0_i32_1 : i32, i32, i32
  }
  func.func @transform_27(%arg0: i32) -> (i32, i32) {
    %c0_i32 = arith.constant 0 : i32
    %c0_i32_0 = arith.constant 0 : i32
    %c0_i32_1 = arith.constant 0 : i32
    return %c0_i32, %c0_i32_0 : i32, i32
  }
  func.func @transform_28(%arg0: i32) -> (i32, i32) {
    %c0_i32 = arith.constant 0 : i32
    %c0_i32_0 = arith.constant 0 : i32
    %c0_i32_1 = arith.constant 0 : i32
    return %c0_i32, %c0_i32_0 : i32, i32
  }
  func.func @transform_29(%arg0: i32) -> (i32, i32) {
    %c0_i32 = arith.constant 0 : i32
    %c0_i32_0 = arith.constant 0 : i32
    %c0_i32_1 = arith.constant 0 : i32
    return %c0_i32, %c0_i32_0 : i32, i32
  }
  func.func @transform_30(%arg0: i32) -> (i32, i32) {
    %c0_i32 = arith.constant 0 : i32
    %c0_i32_0 = arith.constant 0 : i32
    %c0_i32_1 = arith.constant 0 : i32
    return %c0_i32, %c0_i32_0 : i32, i32
  }
  func.func @transform_31(%arg0: i32) -> (i32, i32, i32) {
    %c0_i32 = arith.constant 0 : i32
    %c0_i32_0 = arith.constant 0 : i32
    %c0_i32_1 = arith.constant 0 : i32
    %c0_i32_2 = arith.constant 0 : i32
    return %c0_i32, %c0_i32_0, %c0_i32_1 : i32, i32, i32
  }
  func.func @transform_32(%arg0: i32) -> (i32, i32) {
    %c0_i32 = arith.constant 0 : i32
    %c0_i32_0 = arith.constant 0 : i32
    %c0_i32_1 = arith.constant 0 : i32
    return %c0_i32, %c0_i32_0 : i32, i32
  }
  func.func @transform_33(%arg0: i32) -> (i32, i32) {
    %c0_i32 = arith.constant 0 : i32
    %c0_i32_0 = arith.constant 0 : i32
    %c0_i32_1 = arith.constant 0 : i32
    return %c0_i32, %c0_i32_0 : i32, i32
  }
  func.func @transform_34(%arg0: i32) -> (i32, i32, i32) {
    %c0_i32 = arith.constant 0 : i32
    %c0_i32_0 = arith.constant 0 : i32
    %c0_i32_1 = arith.constant 0 : i32
    %c0_i32_2 = arith.constant 0 : i32
    return %c0_i32, %c0_i32_0, %c0_i32_1 : i32, i32, i32
  }
  func.func @transform_35(%arg0: i32) -> (i32, i32) {
    %c0_i32 = arith.constant 0 : i32
    %c0_i32_0 = arith.constant 0 : i32
    %c0_i32_1 = arith.constant 0 : i32
    return %c0_i32, %c0_i32_0 : i32, i32
  }
  func.func @transform_36(%arg0: i32) -> (i32, i32) {
    %c0_i32 = arith.constant 0 : i32
    %c0_i32_0 = arith.constant 0 : i32
    %c0_i32_1 = arith.constant 0 : i32
    return %c0_i32, %c0_i32_0 : i32, i32
  }
  func.func @transform_37(%arg0: i32) -> (i32, i32, i32) {
    %c0_i32 = arith.constant 0 : i32
    %c0_i32_0 = arith.constant 0 : i32
    %c0_i32_1 = arith.constant 0 : i32
    %c0_i32_2 = arith.constant 0 : i32
    return %c0_i32, %c0_i32_0, %c0_i32_1 : i32, i32, i32
  }
  func.func @transform_38(%arg0: i32) -> (i32, i32) {
    %c0_i32 = arith.constant 0 : i32
    %c0_i32_0 = arith.constant 0 : i32
    %c0_i32_1 = arith.constant 0 : i32
    return %c0_i32, %c0_i32_0 : i32, i32
  }
  func.func @transform_39(%arg0: i32) -> (i32, i32) {
    %c0_i32 = arith.constant 0 : i32
    %c0_i32_0 = arith.constant 0 : i32
    %c0_i32_1 = arith.constant 0 : i32
    return %c0_i32, %c0_i32_0 : i32, i32
  }
  func.func @transform_40(%arg0: i32) -> (i32, i32, i32) {
    %c0_i32 = arith.constant 0 : i32
    %c0_i32_0 = arith.constant 0 : i32
    %c0_i32_1 = arith.constant 0 : i32
    %c0_i32_2 = arith.constant 0 : i32
    return %c0_i32, %c0_i32_0, %c0_i32_1 : i32, i32, i32
  }
  func.func @transform_41(%arg0: i32) -> (i32, i32) {
    %c0_i32 = arith.constant 0 : i32
    %c0_i32_0 = arith.constant 0 : i32
    %c0_i32_1 = arith.constant 0 : i32
    return %c0_i32, %c0_i32_0 : i32, i32
  }
  func.func @transform_42(%arg0: i32) -> (i32, i32) {
    %c0_i32 = arith.constant 0 : i32
    %c0_i32_0 = arith.constant 0 : i32
    %c0_i32_1 = arith.constant 0 : i32
    return %c0_i32, %c0_i32_0 : i32, i32
  }
  func.func @transform_43(%arg0: i32) -> (i32, i32, i32) {
    %c0_i32 = arith.constant 0 : i32
    %c0_i32_0 = arith.constant 0 : i32
    %c0_i32_1 = arith.constant 0 : i32
    %c0_i32_2 = arith.constant 0 : i32
    return %c0_i32, %c0_i32_0, %c0_i32_1 : i32, i32, i32
  }
  func.func @transform_44(%arg0: i32) -> (i32, i32) {
    %c0_i32 = arith.constant 0 : i32
    %c0_i32_0 = arith.constant 0 : i32
    %c0_i32_1 = arith.constant 0 : i32
    return %c0_i32, %c0_i32_0 : i32, i32
  }
  func.func @transform_45(%arg0: i32) -> (i32, i32) {
    %c0_i32 = arith.constant 0 : i32
    %c0_i32_0 = arith.constant 0 : i32
    %c0_i32_1 = arith.constant 0 : i32
    return %c0_i32, %c0_i32_0 : i32, i32
  }
  func.func @transform_46(%arg0: i32) -> (i32, i32, i32) {
    %c0_i32 = arith.constant 0 : i32
    %c0_i32_0 = arith.constant 0 : i32
    %c0_i32_1 = arith.constant 0 : i32
    %c0_i32_2 = arith.constant 0 : i32
    return %c0_i32, %c0_i32_0, %c0_i32_1 : i32, i32, i32
  }
  func.func @transform_47(%arg0: i32) -> (i32, i32) {
    %c0_i32 = arith.constant 0 : i32
    %c0_i32_0 = arith.constant 0 : i32
    %c0_i32_1 = arith.constant 0 : i32
    return %c0_i32, %c0_i32_0 : i32, i32
  }
  func.func @transform_48(%arg0: i32) -> (i32, i32, i32) {
    %c0_i32 = arith.constant 0 : i32
    %c0_i32_0 = arith.constant 0 : i32
    %c0_i32_1 = arith.constant 0 : i32
    %c0_i32_2 = arith.constant 0 : i32
    return %c0_i32, %c0_i32_0, %c0_i32_1 : i32, i32, i32
  }
  func.func @transform_49(%arg0: i32) -> (i32, i32) {
    %c0_i32 = arith.constant 0 : i32
    %c0_i32_0 = arith.constant 0 : i32
    %c0_i32_1 = arith.constant 0 : i32
    return %c0_i32, %c0_i32_0 : i32, i32
  }
  func.func @transform_50(%arg0: i32) -> (i32, i32, i32) {
    %c0_i32 = arith.constant 0 : i32
    %c0_i32_0 = arith.constant 0 : i32
    %c0_i32_1 = arith.constant 0 : i32
    %c0_i32_2 = arith.constant 0 : i32
    return %c0_i32, %c0_i32_0, %c0_i32_1 : i32, i32, i32
  }
  func.func @transform_51(%arg0: i32) -> (i32, i32, i32) {
    %c0_i32 = arith.constant 0 : i32
    %c0_i32_0 = arith.constant 0 : i32
    %c0_i32_1 = arith.constant 0 : i32
    return %arg0, %c0_i32, %c0_i32_0 : i32, i32, i32
  }
  func.func @transform_52(%arg0: i32) -> (i32, i32, i32) {
    %c0_i32 = arith.constant 0 : i32
    %c0_i32_0 = arith.constant 0 : i32
    %c0_i32_1 = arith.constant 0 : i32
    return %arg0, %c0_i32, %c0_i32_0 : i32, i32, i32
  }
  func.func @transform_53(%arg0: i32) -> (i32, i32, i32) {
    %c0_i32 = arith.constant 0 : i32
    %c0_i32_0 = arith.constant 0 : i32
    %c0_i32_1 = arith.constant 0 : i32
    return %arg0, %c0_i32, %c0_i32_0 : i32, i32, i32
  }
}

</mosaic_0001>

<bundles_post_ra>
// kernel: _nb201_forward.1
= control target key start
LH: loop header
LB: loop body
LE: loop exit
PB: predicated region body
PF: predicated region fallthrough
CT: control target
= control target key end

     0   :  { %s5210_s3 = smov 1   ;;  %s5211_s7 = smov 2   ;;  %s6144_s0 = inlined_call_operand.smem [shape: u32[54], index: -1, kind: input, shape index: {}] }
   0x1   :  { %s5308_s6 = sld [smem:[%s6144_s0 + %s5210_s3]]   ;;  %s5212_s11 = smov 3  }
   0x2   :  { %s5313_s10 = sld [smem:[%s6144_s0 + %s5211_s7]]   ;;  %s5213_s15 = smov 4  }
   0x3   :  { %s5318_s14 = sld [smem:[%s6144_s0 + %s5212_s11]]   ;;  %s5214_s19 = smov 5  }
   0x4   :  { %s5323_s18 = sld [smem:[%s6144_s0 + %s5213_s15]]   ;;  %s5215_s23 = smov 6  }
   0x5   :  { %s5328_s22 = sld [smem:[%s6144_s0 + %s5214_s19]]   ;;  %s5216_s27 = smov 7  }
   0x6   :  { %s5333_s26 = sld [smem:[%s6144_s0 + %s5215_s23]]   ;;  %s5217_s1 = smov 8  }
   0x7   :  { %6203 = sst [smem:[#allocation84_spill]] %s5308_s6  ;;  %s5218_s5 = smov 9  }
   0x8   :  { %6204 = sst [smem:[#allocation85_spill]] %s5313_s10  ;;  %s5219_s11 = smov 11  }
   0x9   :  { %6205 = sst [smem:[#allocation86_spill]] %s5318_s14  ;;  %s5220_s16 = smov 13  }
   0xa   :  { %s5338_s30 = sld [smem:[%s6144_s0 + %s5216_s27]]   ;;  %s5221_s21 = smov 14  }
   0xb   :  { %6206 = sst [smem:[#allocation87_spill]] %s5328_s22  ;;  %s5222_s27 = smov 15  }
   0xc   :  { %6207 = sst [smem:[#allocation88_spill]] %s5333_s26  ;;  %s5223_s2 = smov 18  }
   0xd   :  { %s5343_s4 = sld [smem:[%s6144_s0 + %s5217_s1]]   ;;  %s5224_s8 = smov 19  }
   0xe   :  { %s5348_s9 = sld [smem:[%s6144_s0 + %s5218_s5]]   ;;  %s5226_s23 = smov 21  }
   0xf   :  { %s5353_s15 = sld [smem:[%s6144_s0 + %s5219_s11]]   ;;  %s5227_s29 = smov 23  }
  0x10   :  { %s5358_s20 = sld [smem:[%s6144_s0 + %s5220_s16]]   ;;  %s5225_s16 = smov 20  }
  0x11   :  { %s5363_s25 = sld [smem:[%s6144_s0 + %s5221_s21]]  }
  0x12   :  { %s5368_s1 = sld [smem:[%s6144_s0 + %s5222_s27]]  }
  0x13   :  { %6208 = sst [smem:[#allocation89_spill]] %s5343_s4 }
  0x14   :  { %6209 = sst [smem:[#allocation90_spill]] %s5348_s9 }
  0x15   :  { %6210 = sst [smem:[#allocation91_spill]] %s5353_s15 }
  0x16   :  { %6211 = sst [smem:[#allocation92_spill]] %s5358_s20 }
  0x17   :  { %s5373_s7 = sld [smem:[%s6144_s0 + %s5223_s2]]  }
  0x18   :  { %6212 = sst [smem:[#allocation93_spill]] %s5368_s1 }
  0x19   :  { %s5378_s13 = sld [smem:[%s6144_s0 + %s5224_s8]]   ;;  %s5228_s8 = smov 24  }
  0x1a   :  { %s5383_s21 = sld [smem:[%s6144_s0 + %s5225_s16]]   ;;  %s5229_s16 = smov 25  }
  0x1b   :  { %s5388_s28 = sld [smem:[%s6144_s0 + %s5226_s23]]   ;;  %s5230_s23 = smov 26  }
  0x1c   :  { %s5393_s5 = sld [smem:[%s6144_s0 + %s5227_s29]]   ;;  %s5231_s29 = smov 27  }
  0x1d   :  { %6213 = sst [smem:[#allocation94_spill]] %s5373_s7 }
  0x1e   :  { %s5398_s6 = sld [smem:[%s6144_s0 + %s5228_s8]]   ;;  %s5232_s8 = smov 28  }
  0x1f   :  { %6214 = sst [smem:[#allocation95_spill]] %s5378_s13 }
  0x20   :  { %s5403_s4 = sld [smem:[%s6144_s0 + %s5229_s16]]   ;;  %s5233_s16 = smov 29  }
  0x21   :  { %6215 = sst [smem:[#allocation96_spill]] %s5388_s28 }
  0x22   :  { %6216 = sst [smem:[#allocation97_spill]] %s5393_s5 }
  0x23   :  { %s5408_s22 = sld [smem:[%s6144_s0 + %s5230_s23]]   ;;  %s5234_s23 = smov 30  }
  0x24   :  { %6217 = sst [smem:[#allocation98_spill]] %s5398_s6 }
  0x25   :  { %s5413_s10 = sld [smem:[%s6144_s0 + %s5231_s29]]   ;;  %s5235_s29 = smov 31  }
  0x26   :  { %6218 = sst [smem:[#allocation99_spill]] %s5403_s4 }
  0x27   :  { %s5418_s6 = sld [smem:[%s6144_s0 + %s5232_s8]]   ;;  %s5236_s8 = smov 32  }
  0x28   :  { %s5423_s28 = sld [smem:[%s6144_s0 + %s5233_s16]]   ;;  %s5237_s16 = smov 33  }
  0x29   :  { %6219 = sst [smem:[#allocation100_spill]] %s5408_s22 }
  0x2a   :  { %s5428_s22 = sld [smem:[%s6144_s0 + %s5234_s23]]   ;;  %s5238_s23 = smov 34  }
  0x2b   :  { %6220 = sst [smem:[#allocation101_spill]] %s5413_s10 }
  0x2c   :  { %s5433_s13 = sld [smem:[%s6144_s0 + %s5235_s29]]   ;;  %s5239_s29 = smov 35  }
  0x2d   :  { %6221 = sst [smem:[#allocation102_spill]] %s5418_s6 }
  0x2e   :  { %s5438_s6 = sld [smem:[%s6144_s0 + %s5236_s8]]   ;;  %s5240_s8 = smov 36  }
  0x2f   :  { %s5443_s1 = sld [smem:[%s6144_s0 + %s5237_s16]]   ;;  %s5241_s16 = smov 37  }
  0x30   :  { %6222 = sst [smem:[#allocation103_spill]] %s5428_s22 }
  0x31   :  { %s5448_s22 = sld [smem:[%s6144_s0 + %s5238_s23]]   ;;  %s5242_s23 = smov 38  }
  0x32   :  { %s5453_s20 = sld [smem:[%s6144_s0 + %s5239_s29]]   ;;  %s5243_s29 = smov 39  }
  0x33   :  { %s5463_s9 = sld [smem:[%s6144_s0 + %s5241_s16]]   ;;  %s5245_s16 = smov 41  }
  0x34   :  { %6223 = sst [smem:[#allocation104_spill]] %s5438_s6 }
  0x35   :  { %6224 = sst [smem:[#allocation105_spill]] %s5443_s1 }
  0x36   :  { %s5458_s6 = sld [smem:[%s6144_s0 + %s5240_s8]]   ;;  %s5244_s8 = smov 40  }
  0x37   :  { %6225 = sst [smem:[#allocation106_spill]] %s5448_s22 }
  0x38   :  { %s5468_s22 = sld [smem:[%s6144_s0 + %s5242_s23]]   ;;  %s5246_s23 = smov 42  }
  0x39   :  { %6227 = sst [smem:[#allocation108_spill]] %s5463_s9 }
  0x3a   :  { %s5473_s26 = sld [smem:[%s6144_s0 + %s5243_s29]]   ;;  %s5247_s29 = smov 43  }
  0x3b   :  { %s5483_s14 = sld [smem:[%s6144_s0 + %s5245_s16]]   ;;  %s5249_s16 = smov 45  }
  0x3c   :  { %6226 = sst [smem:[#allocation107_spill]] %s5458_s6 }
  0x3d   :  { %s5478_s6 = sld [smem:[%s6144_s0 + %s5244_s8]]   ;;  %s5248_s8 = smov 44  }
  0x3e   :  { %6228 = sst [smem:[#allocation109_spill]] %s5468_s22 }
  0x3f   :  { %s5488_s22 = sld [smem:[%s6144_s0 + %s5246_s23]]   ;;  %s5250_s23 = smov 46  }
  0x40   :  { %6229 = sst [smem:[#allocation110_spill]] %s5473_s26 }
  0x41   :  { %6231 = sst [smem:[#allocation112_spill]] %s5483_s14 }
  0x42   :  { %s5493_s26 = sld [smem:[%s6144_s0 + %s5247_s29]]   ;;  %s5251_s29 = smov 47  }
  0x43   :  { %6230 = sst [smem:[#allocation111_spill]] %s5478_s6 }
  0x44   :  { %s5498_s6 = sld [smem:[%s6144_s0 + %s5248_s8]]   ;;  %s5252_s8 = smov 48  }
  0x45   :  { %6232 = sst [smem:[#allocation113_spill]] %s5488_s22 }
  0x46   :  { %s5503_s14 = sld [smem:[%s6144_s0 + %s5249_s16]]   ;;  %s5253_s16 = smov 49  }
  0x47   :  { %s5508_s22 = sld [smem:[%s6144_s0 + %s5250_s23]]   ;;  %s5254_s23 = smov 51  }
  0x48   :  { %6233 = sst [smem:[#allocation114_spill]] %s5493_s26 }
  0x49   :  { %s5513_s26 = sld [smem:[%s6144_s0 + %s5251_s29]]   ;;  %s5255_s29 = smov 52  }
  0x4a   :  { %6234 = sst [smem:[#allocation115_spill]] %s5498_s6 }
  0x4b   :  { %s5518_s6 = sld [smem:[%s6144_s0 + %s5252_s8]]   ;;  %s5256_s8 = smov 53  }
  0x4c   :  { %6235 = sst [smem:[#allocation116_spill]] %s5503_s14 }
  0x4d   :  { %6236 = sst [smem:[#allocation117_spill]] %s5508_s22 }
  0x4e   :  { %s5523_s14 = sld [smem:[%s6144_s0 + %s5253_s16]]  }
  0x4f   :  { %6237 = sst [smem:[#allocation118_spill]] %s5513_s26 }
  0x50   :  { %s5528_s22 = sld [smem:[%s6144_s0 + %s5254_s23]]  }
  0x51   :  { %6238 = sst [smem:[#allocation119_spill]] %s5518_s6 }
  0x52   :  { %s5533_s26 = sld [smem:[%s6144_s0 + %s5255_s29]]  }
  0x53   :  { %s5538_s6 = sld [smem:[%s6144_s0 + %s5256_s8]]  }
  0x54   :  { %113 = vsyncpa [#allocation3], 0 }
  0x55   :  { %114 = vsyncpa [#allocation5], 0 }
  0x56   :  { %115 = vsyncpa [#allocation8], 0 }
  0x57   :  { %116 = vsyncpa [#allocation11], 0 }
  0x58   :  { %117 = vsyncpa [#allocation14], 0 }
  0x59   :  { %118 = vsyncpa [#allocation17], 0 }
  0x5a   :  { %119 = vsyncpa [#allocation20], 0 }
  0x5b   :  { %120 = vsyncpa [#allocation23], 0 }
  0x5c   :  { %121 = vsyncpa [#allocation26], 0 }
  0x5d   :  { %122 = vsyncpa [#allocation29], 0 }
  0x5e   :  { %123 = vsyncpa [#allocation32], 0 }
  0x5f   :  { %124 = vsyncpa [#allocation35], 0 }
  0x60   :  { %125 = vsyncpa [#allocation38], 0 }
  0x61   :  { %126 = vsyncpa [#allocation41], 0 }
  0x62   :  { %127 = vsyncpa [#allocation44], 0 }
  0x63   :  { %128 = vsyncpa [#allocation47], 0 }
  0x64   :  { %129 = vsyncpa [#allocation50], 0 }
  0x65   :  { %130 = vsyncpa [#allocation53], 0 }
  0x66   :  { %131 = vsyncpa [#allocation56], 0 }
  0x67   :  { %132 = vsyncpa [#allocation59], 0 }
  0x68   :  { %133 = vsyncpa [#allocation62], 0  ;;  %s5540_s0 = smov 0  }
  0x69 LB: > { %s6239_s10 = sld [smem:[#allocation101_spill]]  ;;  %s5546_s16 = sadd.s32 4294967295, %s5208_s0   ;;  %s5208_s0 = sphi %s5540_s0, %s139_s0  }
  0x6a   : > { %s6240_s9 = sld [smem:[#allocation108_spill]]  ;;  %p3321_p0 = scmp.ge.s32.totalorder %s5208_s0, 1 }
  0x6b   : > { %s6241_s7 = sld [smem:[#allocation94_spill]]  ;;  %p1298_p1 = scmp.lt.s32.totalorder %s5208_s0, 3 }
  0x6c   : > { %s6242_s5 = sld [smem:[#allocation97_spill]] }
  0x6d   : > { %s6243_s4 = sld [smem:[#allocation99_spill]]  ;;  %p5550_p2 = pnand %p3321_p0, %p1298_p1 }
  0x6e   : > { %s6244_s1 = sld [smem:[#allocation105_spill]]  ;;  %p3811_p3 = scmp.eq.s32.totalorder (!%p5550_p2), %s5546_s16, 0 }
  0x6f   : > { %s6245_s15 = sld [smem:[#allocation91_spill]]  ;;  %1302 = sbr.rel (%p5550_p2) target bundleno = 633 (0x279), region = 12 }
  0x70   : > { %s1328_s19 = sshll.u32 (!%p5550_p2), %s5323_s18, 4  ;;  %s5257_s23 = smov (!%p5550_p2), [#allocation4]   ;;  %s1329_s19 = int_to_ptr.hbm [resolvable:$true] %s1328_s19 }
  0x71   : > { %s1330_s24 = sshll.u32 (!%p5550_p2), %s5257_s23, 4  ;;  %s1355_s27 = sshll.u32 (!%p5550_p2), %s5338_s30, 4  ;;  %s1331_s24 = int_to_ptr.vmem [resolvable:$true] %s1330_s24  ;;  %s5559_s27 = int_to_ptr.hbm [resolvable:$true] %s1355_s27 }
  0x72   : > { %s3998_s29 = sshra.s32 (!%p5550_p2), %s1329_s19, 4  ;;  %s4004_s3 = scalar_lea.hbm (!%p5550_p2), %s5323_s18, 1  ;;  %s3999_s29 = int_to_ptr.hbm [resolvable:$true] %s3998_s29 }
  0x73   : > { %s4000_s2 = scalar_lea.hbm (!%p5550_p2), %s3999_s29, 1  ;;  %p4005_p7 = scmp.lt.s32.totalorder (!%p5550_p2), %s3999_s29, %s5323_s18 }
  0x74   : > { %p4001_p4 = scmp.ne.s32.totalorder %s3999_s29, %s4000_s2  ;;  %p4006_p8 = scmp.lt.s32.totalorder %s4004_s3, %s4000_s2 }
  0x76   : > { %p4002_p5 = pnand %p4001_p4, %p3811_p3  ;;  %p4007_p9 = por %p4006_p8, %p4005_p7 }
  0x78   : > { %p4003_p6 = pneg %p4002_p5 }
  0x7a   : > { %p4008_p10 = pnand %p4007_p9, %p4003_p6 }
  0x7c   : > { %4011 = shalt.err (!%p4008_p10)
}
  0x7d   : > { %3654 = dma.hbm_to_vmem [thread:$0]  (%p3811_p3), %s1329_s19, 16, %s1331_s24, [#allocation5]  }
  0x7e   : > { %s1385_s8 = sshll.u32 %s6245_s15, 4  ;;  %s5258_s11 = smov [#allocation7]   ;;  %s5568_s8 = int_to_ptr.hbm [resolvable:$true] %s1385_s8 }
  0x7f   : > { %s1357_s12 = sshll.u32 %s5258_s11, 4  ;;  %s4026_s23 = sshra.s32 %s5559_s27, 4  ;;  %s1358_s12 = int_to_ptr.vmem [resolvable:$true] %s1357_s12  ;;  %s4027_s23 = int_to_ptr.hbm [resolvable:$true] %s4026_s23 }
  0x80   : > { %s4028_s29 = scalar_lea.hbm %s4027_s23, 1  ;;  %s4032_s2 = scalar_lea.hbm %s5338_s30, 1 }
  0x81   : > { %p4029_p11 = scmp.ne.s32.totalorder %s4027_s23, %s4028_s29  ;;  %p4033_p0 = scmp.lt.s32.totalorder %s4027_s23, %s5338_s30 }
  0x82   : > { %p4034_p1 = scmp.lt.s32.totalorder %s4032_s2, %s4028_s29 }
  0x83   : > { %p4030_p12 = pnand %p4029_p11, %p3811_p3 }
  0x84   : > { %p4035_p4 = por %p4034_p1, %p4033_p0 }
  0x85   : > { %p4031_p13 = pneg %p4030_p12 }
  0x87   : > { %p4036_p5 = pnand %p4035_p4, %p4031_p13 }
  0x89   : > { %4039 = shalt.err (!%p4036_p5)
}
  0x8a   : > { %3658 = dma.hbm_to_vmem [thread:$0]  (%p3811_p3), %s5559_s27, 16, %s1358_s12, [#allocation8]  }
  0x8b   : > { %s5259_s19 = smov [#allocation10]   ;;  %s1411_s3 = sshll.u32 %s5363_s25, 4  ;;  %s5579_s3 = int_to_ptr.hbm [resolvable:$true] %s1411_s3 }
  0x8c   : > { %s1387_s24 = sshll.u32 %s5259_s19, 4  ;;  %s4054_s11 = sshra.s32 %s5568_s8, 4  ;;  %s1388_s24 = int_to_ptr.vmem [resolvable:$true] %s1387_s24  ;;  %s4055_s11 = int_to_ptr.hbm [resolvable:$true] %s4054_s11 }
  0x8d   : > { %s4056_s23 = scalar_lea.hbm %s4055_s11, 1  ;;  %s4060_s29 = scalar_lea.hbm %s6245_s15, 1 }
  0x8e   : > { %p4057_p6 = scmp.ne.s32.totalorder %s4055_s11, %s4056_s23  ;;  %p4061_p9 = scmp.lt.s32.totalorder %s4055_s11, %s6245_s15 }
  0x8f   : > { %p4062_p10 = scmp.lt.s32.totalorder %s4060_s29, %s4056_s23 }
  0x90   : > { %p4058_p7 = pnand %p4057_p6, %p3811_p3 }
  0x91   : > { %p4063_p11 = por %p4062_p10, %p4061_p9 }
  0x92   : > { %p4059_p8 = pneg %p4058_p7 }
  0x94   : > { %p4064_p12 = pnand %p4063_p11, %p4059_p8 }
  0x96   : > { %4067 = shalt.err (!%p4064_p12)
}
  0x97   : > { %3662 = dma.hbm_to_vmem [thread:$0]  (%p3811_p3), %s5568_s8, 16, %s1388_s24, [#allocation11]  }
  0x98   : > { %s5260_s27 = smov [#allocation13]   ;;  %s1443_s2 = sshll.u32 %s6241_s7, 4  ;;  %s1444_s2 = int_to_ptr.hbm [resolvable:$true] %s1443_s2 }
  0x99   : > { %s1413_s12 = sshll.u32 %s5260_s27, 4  ;;  %s4082_s19 = sshra.s32 %s5579_s3, 4  ;;  %s1414_s12 = int_to_ptr.vmem [resolvable:$true] %s1413_s12  ;;  %s4083_s19 = int_to_ptr.hbm [resolvable:$true] %s4082_s19 }
  0x9a   : > { %s4084_s11 = scalar_lea.hbm %s4083_s19, 24  ;;  %s4088_s23 = scalar_lea.hbm %s5363_s25, 24 }
  0x9b   : > { %p4085_p13 = scmp.ne.s32.totalorder %s4083_s19, %s4084_s11  ;;  %p4089_p4 = scmp.lt.s32.totalorder %s4083_s19, %s5363_s25 }
  0x9c   : > { %p4090_p5 = scmp.lt.s32.totalorder %s4088_s23, %s4084_s11 }
  0x9d   : > { %p4086_p0 = pnand %p4085_p13, %p3811_p3 }
  0x9e   : > { %p4091_p6 = por %p4090_p5, %p4089_p4 }
  0x9f   : > { %p4087_p1 = pneg %p4086_p0 }
  0xa1   : > { %p4092_p7 = pnand %p4091_p6, %p4087_p1 }
  0xa3   : > { %4095 = shalt.err (!%p4092_p7)
}
  0xa4   : > { %s6174_s29 = smov 64   ;;  %s6178_s8 = smov 4  }
  0xa5   : > { %3666 = dma.hbm_to_vmem [thread:$0]  (%p3811_p3), %s5579_s3, 384, %s1414_s12, [#allocation14], %s6174_s29, %s6174_s29, %s6178_s8  }
  0xa6   : > { %s5263_s24 = smov [#allocation16]   ;;  %s1469_s19 = sshll.u32 %s5383_s21, 4  ;;  %s5602_s19 = int_to_ptr.hbm [resolvable:$true] %s1469_s19 }
  0xa7   : > { %s1445_s27 = sshll.u32 %s5263_s24, 4  ;;  %s4110_s11 = sshra.s32 %s1444_s2, 4  ;;  %s1446_s27 = int_to_ptr.vmem [resolvable:$true] %s1445_s27  ;;  %s4111_s11 = int_to_ptr.hbm [resolvable:$true] %s4110_s11 }
  0xa8   : > { %s4112_s23 = scalar_lea.hbm %s4111_s11, 64  ;;  %s4116_s15 = scalar_lea.hbm %s6241_s7, 64 }
  0xa9   : > { %p4113_p8 = scmp.ne.s32.totalorder %s4111_s11, %s4112_s23  ;;  %p4117_p11 = scmp.lt.s32.totalorder %s4111_s11, %s6241_s7 }
  0xaa   : > { %p4118_p12 = scmp.lt.s32.totalorder %s4116_s15, %s4112_s23 }
  0xab   : > { %p4114_p9 = pnand %p4113_p8, %p3811_p3 }
  0xac   : > { %p4119_p13 = por %p4118_p12, %p4117_p11 }
  0xad   : > { %p4115_p10 = pneg %p4114_p9 }
  0xaf   : > { %p4120_p0 = pnand %p4119_p13, %p4115_p10 }
  0xb1   : > { %4123 = shalt.err (!%p4120_p0)
}
  0xb2   : > { %3670 = dma.hbm_to_vmem [thread:$0]  (%p3811_p3), %s1444_s2, 1024, %s1446_s27, [#allocation17], %s6174_s29, %s6174_s29, %s6178_s8  }
  0xb3   : > { %s1499_s3 = sshll.u32 %s6242_s5, 4  ;;  %s5264_s12 = smov [#allocation19]   ;;  %s5614_s3 = int_to_ptr.hbm [resolvable:$true] %s1499_s3 }
  0xb4   : > { %s1471_s24 = sshll.u32 %s5264_s12, 4  ;;  %s4138_s15 = sshra.s32 %s5602_s19, 4  ;;  %s1472_s24 = int_to_ptr.vmem [resolvable:$true] %s1471_s24  ;;  %s4139_s15 = int_to_ptr.hbm [resolvable:$true] %s4138_s15 }
  0xb5   : > { %s4140_s11 = scalar_lea.hbm %s4139_s15, 12  ;;  %s4144_s23 = scalar_lea.hbm %s5383_s21, 12 }
  0xb6   : > { %p4141_p1 = scmp.ne.s32.totalorder %s4139_s15, %s4140_s11  ;;  %p4145_p6 = scmp.lt.s32.totalorder %s4139_s15, %s5383_s21 }
  0xb7   : > { %p4146_p7 = scmp.lt.s32.totalorder %s4144_s23, %s4140_s11 }
  0xb8   : > { %p4142_p4 = pnand %p4141_p1, %p3811_p3 }
  0xb9   : > { %p4147_p8 = por %p4146_p7, %p4145_p6 }
  0xba   : > { %p4143_p5 = pneg %p4142_p4 }
  0xbc   : > { %p4148_p9 = pnand %p4147_p8, %p4143_p5 }
  0xbe   : > { %4151 = shalt.err (!%p4148_p9)
}
  0xbf   : > { %3674 = dma.hbm_to_vmem [thread:$0]  (%p3811_p3), %s5602_s19, 192, %s1472_s24, [#allocation20], %s6174_s29, %s6174_s29, %s6178_s8  }
  0xc0   : > { %s5265_s2 = smov [#allocation22]   ;;  %s1525_s12 = sshll.u32 %s6243_s4, 4  ;;  %s5628_s12 = int_to_ptr.hbm [resolvable:$true] %s1525_s12 }
  0xc1   : > { %s1501_s27 = sshll.u32 %s5265_s2, 4  ;;  %s4166_s15 = sshra.s32 %s5614_s3, 4  ;;  %s1502_s27 = int_to_ptr.vmem [resolvable:$true] %s1501_s27  ;;  %s4167_s15 = int_to_ptr.hbm [resolvable:$true] %s4166_s15 }
  0xc2   : > { %s4168_s11 = scalar_lea.hbm %s4167_s15, 1  ;;  %s4172_s23 = scalar_lea.hbm %s6242_s5, 1 }
  0xc3   : > { %p4169_p10 = scmp.ne.s32.totalorder %s4167_s15, %s4168_s11  ;;  %p4173_p13 = scmp.lt.s32.totalorder %s4167_s15, %s6242_s5 }
  0xc4   : > { %p4174_p0 = scmp.lt.s32.totalorder %s4172_s23, %s4168_s11 }
  0xc5   : > { %p4170_p11 = pnand %p4169_p10, %p3811_p3 }
  0xc6   : > { %p4175_p1 = por %p4174_p0, %p4173_p13 }
  0xc7   : > { %p4171_p12 = pneg %p4170_p11 }
  0xc9   : > { %p4176_p4 = pnand %p4175_p1, %p4171_p12 }
  0xcb   : > { %4179 = shalt.err (!%p4176_p4)
}
  0xcc   : > { %3678 = dma.hbm_to_vmem [thread:$0]  (%p3811_p3), %s5614_s3, 16, %s1502_s27, [#allocation23]  }
  0xcd   : > { %s1551_s19 = sshll.u32 %s6239_s10, 4  ;;  %s5266_s24 = smov [#allocation25]   ;;  %s5639_s19 = int_to_ptr.hbm [resolvable:$true] %s1551_s19 }
  0xce   : > { %s1527_s2 = sshll.u32 %s5266_s24, 4  ;;  %s4194_s15 = sshra.s32 %s5628_s12, 4  ;;  %s1528_s2 = int_to_ptr.vmem [resolvable:$true] %s1527_s2  ;;  %s4195_s15 = int_to_ptr.hbm [resolvable:$true] %s4194_s15 }
  0xcf   : > { %s4196_s11 = scalar_lea.hbm %s4195_s15, 1  ;;  %s4200_s23 = scalar_lea.hbm %s6243_s4, 1 }
  0xd0   : > { %p4197_p5 = scmp.ne.s32.totalorder %s4195_s15, %s4196_s11  ;;  %p4201_p8 = scmp.lt.s32.totalorder %s4195_s15, %s6243_s4 }
  0xd1   : > { %p4202_p9 = scmp.lt.s32.totalorder %s4200_s23, %s4196_s11 }
  0xd2   : > { %p4198_p6 = pnand %p4197_p5, %p3811_p3 }
  0xd3   : > { %p4203_p10 = por %p4202_p9, %p4201_p8 }
  0xd4   : > { %p4199_p7 = pneg %p4198_p6 }
  0xd6   : > { %p4204_p11 = pnand %p4203_p10, %p4199_p7 }
  0xd8   : > { %4207 = shalt.err (!%p4204_p11)
}
  0xd9   : > { %3682 = dma.hbm_to_vmem [thread:$0]  (%p3811_p3), %s5628_s12, 16, %s1528_s2, [#allocation26]  }
  0xda   : > { %s5267_s3 = smov [#allocation28]   ;;  %s1577_s24 = sshll.u32 %s5423_s28, 4  ;;  %s5650_s24 = int_to_ptr.hbm [resolvable:$true] %s1577_s24 }
  0xdb   : > { %s1553_s27 = sshll.u32 %s5267_s3, 4  ;;  %s4222_s15 = sshra.s32 %s5639_s19, 4  ;;  %s1554_s27 = int_to_ptr.vmem [resolvable:$true] %s1553_s27  ;;  %s4223_s15 = int_to_ptr.hbm [resolvable:$true] %s4222_s15 }
  0xdc   : > { %s4224_s11 = scalar_lea.hbm %s4223_s15, 4  ;;  %s4228_s23 = scalar_lea.hbm %s6239_s10, 4 }
  0xdd   : > { %p4225_p12 = scmp.ne.s32.totalorder %s4223_s15, %s4224_s11  ;;  %p4229_p1 = scmp.lt.s32.totalorder %s4223_s15, %s6239_s10 }
  0xde   : > { %p4230_p4 = scmp.lt.s32.totalorder %s4228_s23, %s4224_s11 }
  0xdf   : > { %p4226_p13 = pnand %p4225_p12, %p3811_p3 }
  0xe0   : > { %p4231_p5 = por %p4230_p4, %p4229_p1 }
  0xe1   : > { %p4227_p0 = pneg %p4226_p13 }
  0xe3   : > { %p4232_p6 = pnand %p4231_p5, %p4227_p0 }
  0xe5   : > { %4235 = shalt.err (!%p4232_p6)
}
  0xe6   : > { %3686 = dma.hbm_to_vmem [thread:$0]  (%p3811_p3), %s5639_s19, 64, %s1554_s27, [#allocation29]  }
  0xe7   : > { %s1600_s12 = sshll.u32 %s5433_s13, 4  ;;  %s5268_s2 = smov [#allocation31]   ;;  %s5661_s12 = int_to_ptr.hbm [resolvable:$true] %s1600_s12 }
  0xe8   : > { %s1579_s3 = sshll.u32 %s5268_s2, 4  ;;  %s4250_s15 = sshra.s32 %s5650_s24, 4  ;;  %s1580_s3 = int_to_ptr.vmem [resolvable:$true] %s1579_s3  ;;  %s4251_s15 = int_to_ptr.hbm [resolvable:$true] %s4250_s15 }
  0xe9   : > { %s4252_s11 = scalar_lea.hbm %s4251_s15, 1  ;;  %s4256_s23 = scalar_lea.hbm %s5423_s28, 1 }
  0xea   : > { %p4253_p7 = scmp.ne.s32.totalorder %s4251_s15, %s4252_s11  ;;  %p4257_p10 = scmp.lt.s32.totalorder %s4251_s15, %s5423_s28 }
  0xeb   : > { %p4258_p11 = scmp.lt.s32.totalorder %s4256_s23, %s4252_s11 }
  0xec   : > { %p4254_p8 = pnand %p4253_p7, %p3811_p3 }
  0xed   : > { %p4259_p12 = por %p4258_p11, %p4257_p10 }
  0xee   : > { %p4255_p9 = pneg %p4254_p8 }
  0xf0   : > { %p4260_p13 = pnand %p4259_p12, %p4255_p9 }
  0xf2   : > { %4263 = shalt.err (!%p4260_p13)
}
  0xf3   : > { %3690 = dma.hbm_to_vmem [thread:$0]  (%p3811_p3), %s5650_s24, 16, %s1580_s3, [#allocation32]  }
  0xf4   : > { %s5269_s19 = smov [#allocation34]   ;;  %s1627_s2 = sshll.u32 %s6244_s1, 4  ;;  %s5672_s2 = int_to_ptr.hbm [resolvable:$true] %s1627_s2 }
  0xf5   : > { %s1602_s27 = sshll.u32 %s5269_s19, 4  ;;  %s4278_s15 = sshra.s32 %s5661_s12, 4  ;;  %s1603_s27 = int_to_ptr.vmem [resolvable:$true] %s1602_s27  ;;  %s4279_s15 = int_to_ptr.hbm [resolvable:$true] %s4278_s15 }
  0xf6   : > { %s4280_s11 = scalar_lea.hbm %s4279_s15, 64  ;;  %s4284_s23 = scalar_lea.hbm %s5433_s13, 64 }
  0xf7   : > { %p4281_p0 = scmp.ne.s32.totalorder %s4279_s15, %s4280_s11  ;;  %p4285_p5 = scmp.lt.s32.totalorder %s4279_s15, %s5433_s13 }
  0xf8   : > { %p4286_p6 = scmp.lt.s32.totalorder %s4284_s23, %s4280_s11 }
  0xf9   : > { %p4282_p1 = pnand %p4281_p0, %p3811_p3 }
  0xfa   : > { %p4287_p7 = por %p4286_p6, %p4285_p5 }
  0xfb   : > { %p4283_p4 = pneg %p4282_p1 }
  0xfd   : > { %p4288_p8 = pnand %p4287_p7, %p4283_p4 }
  0xff   : > { %4291 = shalt.err (!%p4288_p8)
}
 0x100   : > { %3694 = dma.hbm_to_vmem [thread:$0]  (%p3811_p3), %s5661_s12, 1024, %s1603_s27, [#allocation35], %s6174_s29, %s6174_s29, %s6178_s8  }
 0x101   : > { %s1653_s24 = sshll.u32 %s5453_s20, 4  ;;  %s5270_s3 = smov [#allocation37]   ;;  %s5686_s24 = int_to_ptr.hbm [resolvable:$true] %s1653_s24 }
 0x102   : > { %s1629_s19 = sshll.u32 %s5270_s3, 4  ;;  %s4306_s15 = sshra.s32 %s5672_s2, 4  ;;  %s1630_s19 = int_to_ptr.vmem [resolvable:$true] %s1629_s19  ;;  %s4307_s15 = int_to_ptr.hbm [resolvable:$true] %s4306_s15 }
 0x103   : > { %s4308_s11 = scalar_lea.hbm %s4307_s15, 1  ;;  %s4312_s23 = scalar_lea.hbm %s6244_s1, 1 }
 0x104   : > { %p4309_p9 = scmp.ne.s32.totalorder %s4307_s15, %s4308_s11  ;;  %p4313_p12 = scmp.lt.s32.totalorder %s4307_s15, %s6244_s1 }
 0x105   : > { %p4314_p13 = scmp.lt.s32.totalorder %s4312_s23, %s4308_s11 }
 0x106   : > { %p4310_p10 = pnand %p4309_p9, %p3811_p3 }
 0x107   : > { %p4315_p0 = por %p4314_p13, %p4313_p12 }
 0x108   : > { %p4311_p11 = pneg %p4310_p10 }
 0x10a   : > { %p4316_p1 = pnand %p4315_p0, %p4311_p11 }
 0x10c   : > { %4319 = shalt.err (!%p4316_p1)
}
 0x10d   : > { %3698 = dma.hbm_to_vmem [thread:$0]  (%p3811_p3), %s5672_s2, 16, %s1630_s19, [#allocation38]  }
 0x10e   : > { %s5271_s12 = smov [#allocation40]   ;;  %s1676_s3 = sshll.u32 %s6240_s9, 4  ;;  %s5697_s3 = int_to_ptr.hbm [resolvable:$true] %s1676_s3 }
 0x10f   : > { %s1655_s27 = sshll.u32 %s5271_s12, 4  ;;  %s4334_s15 = sshra.s32 %s5686_s24, 4  ;;  %s1656_s27 = int_to_ptr.vmem [resolvable:$true] %s1655_s27  ;;  %s4335_s15 = int_to_ptr.hbm [resolvable:$true] %s4334_s15 }
 0x110   : > { %s4336_s11 = scalar_lea.hbm %s4335_s15, 1  ;;  %s4340_s23 = scalar_lea.hbm %s5453_s20, 1 }
 0x111   : > { %p4337_p4 = scmp.ne.s32.totalorder %s4335_s15, %s4336_s11  ;;  %p4341_p7 = scmp.lt.s32.totalorder %s4335_s15, %s5453_s20 }
 0x112   : > { %p4342_p8 = scmp.lt.s32.totalorder %s4340_s23, %s4336_s11 }
 0x113   : > { %p4338_p5 = pnand %p4337_p4, %p3811_p3 }
 0x114   : > { %p4343_p9 = por %p4342_p8, %p4341_p7 }
 0x115   : > { %p4339_p6 = pneg %p4338_p5 }
 0x117   : > { %p4344_p10 = pnand %p4343_p9, %p4339_p6 }
 0x119   : > { %4347 = shalt.err (!%p4344_p10)
}
 0x11a   : > { %s6247_s2 = sld [smem:[#allocation110_spill]]  ;;  %s5272_s12 = smov [#allocation43]  }
 0x11b   : > { %3702 = dma.hbm_to_vmem [thread:$0]  (%p3811_p3), %s5686_s24, 16, %s1656_s27, [#allocation41]  }
 0x11c   : > { %s1678_s29 = sshll.u32 %s5272_s12, 4  ;;  %s4362_s15 = sshra.s32 %s5697_s3, 4  ;;  %s1679_s29 = int_to_ptr.vmem [resolvable:$true] %s1678_s29  ;;  %s4363_s15 = int_to_ptr.hbm [resolvable:$true] %s4362_s15 }
 0x11d   : > { %s4364_s11 = scalar_lea.hbm %s4363_s15, 64  ;;  %s4368_s23 = scalar_lea.hbm %s6240_s9, 64 }
 0x11e   : > { %p4365_p11 = scmp.ne.s32.totalorder %s4363_s15, %s4364_s11  ;;  %p4369_p0 = scmp.lt.s32.totalorder %s4363_s15, %s6240_s9 }
 0x11f   : > { %p4370_p1 = scmp.lt.s32.totalorder %s4368_s23, %s4364_s11 }
 0x120   : > { %s1703_s19 = sshll.u32 %s6247_s2, 4  ;;  %p4366_p12 = pnand %p4365_p11, %p3811_p3  ;;  %s5708_s19 = int_to_ptr.hbm [resolvable:$true] %s1703_s19 }
 0x121   : > { %p4371_p4 = por %p4370_p1, %p4369_p0 }
 0x122   : > { %p4367_p13 = pneg %p4366_p12 }
 0x124   : > { %p4372_p5 = pnand %p4371_p4, %p4367_p13 }
 0x126   : > { %4375 = shalt.err (!%p4372_p5)
}
 0x127   : > { %s6248_s24 = smov 64   ;;  %s6249_s27 = sld [smem:[#allocation112_spill]] }
 0x128   : > { %3706 = dma.hbm_to_vmem [thread:$0]  (%p3811_p3), %s5697_s3, 1024, %s1679_s29, [#allocation44], %s6248_s24, %s6248_s24, %s6178_s8  }
 0x129   : > { %s5273_s12 = smov [#allocation46]   ;;  %s4390_s15 = sshra.s32 %s5708_s19, 4  ;;  %s4391_s15 = int_to_ptr.hbm [resolvable:$true] %s4390_s15 }
 0x12a   : > { %s1705_s1 = sshll.u32 %s5273_s12, 4  ;;  %s4392_s11 = scalar_lea.hbm %s4391_s15, 1  ;;  %s1706_s1 = int_to_ptr.vmem [resolvable:$true] %s1705_s1 }
 0x12b   : > { %p4393_p6 = scmp.ne.s32.totalorder %s4391_s15, %s4392_s11  ;;  %s4396_s23 = scalar_lea.hbm %s6247_s2, 1 }
 0x12c   : > { %p4397_p9 = scmp.lt.s32.totalorder %s4391_s15, %s6247_s2  ;;  %p4398_p10 = scmp.lt.s32.totalorder %s4396_s23, %s4392_s11 }
 0x12d   : > { %s1729_s4 = sshll.u32 %s6249_s27, 4  ;;  %p4394_p7 = pnand %p4393_p6, %p3811_p3  ;;  %s5722_s4 = int_to_ptr.hbm [resolvable:$true] %s1729_s4 }
 0x12e   : > { %p4399_p11 = por %p4398_p10, %p4397_p9 }
 0x12f   : > { %p4395_p8 = pneg %p4394_p7 }
 0x131   : > { %p4400_p12 = pnand %p4399_p11, %p4395_p8 }
 0x133   : > { %4403 = shalt.err (!%p4400_p12)
}
 0x134   : > { %s6250_s29 = sld [smem:[#allocation114_spill]]  ;;  %s5274_s12 = smov [#allocation49]  }
 0x135   : > { %3710 = dma.hbm_to_vmem [thread:$0]  (%p3811_p3), %s5708_s19, 16, %s1706_s1, [#allocation47]  }
 0x136   : > { %s1731_s8 = sshll.u32 %s5274_s12, 4  ;;  %s4418_s15 = sshra.s32 %s5722_s4, 4  ;;  %s1732_s8 = int_to_ptr.vmem [resolvable:$true] %s1731_s8  ;;  %s4419_s15 = int_to_ptr.hbm [resolvable:$true] %s4418_s15 }
 0x137   : > { %s4420_s11 = scalar_lea.hbm %s4419_s15, 1  ;;  %s4424_s23 = scalar_lea.hbm %s6249_s27, 1 }
 0x138   : > { %p4421_p13 = scmp.ne.s32.totalorder %s4419_s15, %s4420_s11  ;;  %p4425_p4 = scmp.lt.s32.totalorder %s4419_s15, %s6249_s27 }
 0x139   : > { %p4426_p5 = scmp.lt.s32.totalorder %s4424_s23, %s4420_s11 }
 0x13a   : > { %s1752_s3 = sshll.u32 %s6250_s29, 4  ;;  %p4422_p0 = pnand %p4421_p13, %p3811_p3  ;;  %s5733_s3 = int_to_ptr.hbm [resolvable:$true] %s1752_s3 }
 0x13b   : > { %p4427_p6 = por %p4426_p5, %p4425_p4 }
 0x13c   : > { %p4423_p1 = pneg %p4422_p0 }
 0x13e   : > { %p4428_p7 = pnand %p4427_p6, %p4423_p1 }
 0x140   : > { %4431 = shalt.err (!%p4428_p7)
}
 0x141   : > { %s6251_s1 = sld [smem:[#allocation116_spill]]  ;;  %s5275_s19 = smov [#allocation52]  }
 0x142   : > { %3714 = dma.hbm_to_vmem [thread:$0]  (%p3811_p3), %s5722_s4, 16, %s1732_s8, [#allocation50]  }
 0x143   : > { %s1754_s12 = sshll.u32 %s5275_s19, 4  ;;  %s4446_s15 = sshra.s32 %s5733_s3, 4  ;;  %s1755_s12 = int_to_ptr.vmem [resolvable:$true] %s1754_s12  ;;  %s4447_s15 = int_to_ptr.hbm [resolvable:$true] %s4446_s15 }
 0x144   : > { %s4448_s11 = scalar_lea.hbm %s4447_s15, 64  ;;  %s4452_s23 = scalar_lea.hbm %s6250_s29, 64 }
 0x145   : > { %p4449_p8 = scmp.ne.s32.totalorder %s4447_s15, %s4448_s11  ;;  %p4453_p11 = scmp.lt.s32.totalorder %s4447_s15, %s6250_s29 }
 0x146   : > { %p4454_p12 = scmp.lt.s32.totalorder %s4452_s23, %s4448_s11 }
 0x147   : > { %s1779_s2 = sshll.u32 %s6251_s1, 4  ;;  %p4450_p9 = pnand %p4449_p8, %p3811_p3  ;;  %s5744_s2 = int_to_ptr.hbm [resolvable:$true] %s1779_s2 }
 0x148   : > { %p4455_p13 = por %p4454_p12, %p4453_p11 }
 0x149   : > { %p4451_p10 = pneg %p4450_p9 }
 0x14b   : > { %p4456_p0 = pnand %p4455_p13, %p4451_p10 }
 0x14d   : > { %4459 = shalt.err (!%p4456_p0)
}
 0x14e   : > { %s6252_s4 = smov 4   ;;  %s6253_s8 = sld [smem:[#allocation118_spill]] }
 0x14f   : > { %3718 = dma.hbm_to_vmem [thread:$0]  (%p3811_p3), %s5733_s3, 1024, %s1755_s12, [#allocation53], %s6248_s24, %s6248_s24, %s6252_s4  }
 0x150   : > { %s5276_s5 = smov [#allocation55]   ;;  %s4474_s15 = sshra.s32 %s5744_s2, 4  ;;  %s4475_s15 = int_to_ptr.hbm [resolvable:$true] %s4474_s15 }
 0x151   : > { %s1781_s7 = sshll.u32 %s5276_s5, 4  ;;  %s4476_s11 = scalar_lea.hbm %s4475_s15, 1  ;;  %s1782_s7 = int_to_ptr.vmem [resolvable:$true] %s1781_s7 }
 0x152   : > { %p4477_p1 = scmp.ne.s32.totalorder %s4475_s15, %s4476_s11  ;;  %s4480_s23 = scalar_lea.hbm %s6251_s1, 1 }
 0x153   : > { %p4481_p6 = scmp.lt.s32.totalorder %s4475_s15, %s6251_s1  ;;  %p4482_p7 = scmp.lt.s32.totalorder %s4480_s23, %s4476_s11 }
 0x154   : > { %s1805_s19 = sshll.u32 %s6253_s8, 4  ;;  %p4478_p4 = pnand %p4477_p1, %p3811_p3  ;;  %s5758_s19 = int_to_ptr.hbm [resolvable:$true] %s1805_s19 }
 0x155   : > { %p4483_p8 = por %p4482_p7, %p4481_p6 }
 0x156   : > { %p4479_p5 = pneg %p4478_p4 }
 0x158   : > { %p4484_p9 = pnand %p4483_p8, %p4479_p5 }
 0x15a   : > { %4487 = shalt.err (!%p4484_p9)
}
 0x15b   : > { %s6254_s5 = sld [smem:[#allocation86_spill]]  ;;  %s5277_s3 = smov [#allocation58]  }
 0x15c   : > { %3722 = dma.hbm_to_vmem [thread:$0]  (%p3811_p3), %s5744_s2, 16, %s1782_s7, [#allocation56]  }
 0x15d   : > { %s1807_s12 = sshll.u32 %s5277_s3, 4  ;;  %s4502_s10 = sshra.s32 %s5758_s19, 4  ;;  %s1808_s12 = int_to_ptr.vmem [resolvable:$true] %s1807_s12  ;;  %s4503_s10 = int_to_ptr.hbm [resolvable:$true] %s4502_s10 }
 0x15e   : > { %s4504_s15 = scalar_lea.hbm %s4503_s10, 1  ;;  %s4508_s11 = scalar_lea.hbm %s6253_s8, 1 }
 0x15f   : > { %p4505_p10 = scmp.ne.s32.totalorder %s4503_s10, %s4504_s15  ;;  %p4509_p13 = scmp.lt.s32.totalorder %s4503_s10, %s6253_s8 }
 0x160   : > { %p4510_p0 = scmp.lt.s32.totalorder %s4508_s11, %s4504_s15 }
 0x161   : > { %s1316_s9 = sshll.u32 %s6254_s5, 4  ;;  %p4506_p11 = pnand %p4505_p10, %p3811_p3  ;;  %s1317_s9 = int_to_ptr.hbm [resolvable:$true] %s1316_s9 }
 0x162   : > { %p4511_p1 = por %p4510_p0, %p4509_p13 }
 0x163   : > { %p4507_p12 = pneg %p4506_p11 }
 0x165   : > { %p4512_p4 = pnand %p4511_p1, %p4507_p12 }
 0x167   : > { %4515 = shalt.err (!%p4512_p4)
}
 0x168   : > { %s6255_s7 = sld [smem:[#allocation88_spill]]  ;;  %s5278_s2 = smov [#allocation2]  }
 0x169   : > { %3726 = dma.hbm_to_vmem [thread:$0]  (%p3811_p3), %s5758_s19, 16, %s1808_s12, [#allocation59]  }
 0x16a   : > { %s1318_s23 = sshll.u32 %s5278_s2, 4  ;;  %s4530_s10 = sshra.s32 %s1317_s9, 4  ;;  %s1319_s23 = int_to_ptr.vmem [resolvable:$true] %s1318_s23  ;;  %s4531_s10 = int_to_ptr.hbm [resolvable:$true] %s4530_s10 }
 0x16b   : > { %s4532_s15 = scalar_lea.hbm %s4531_s10, 4  ;;  %s4536_s11 = scalar_lea.hbm %s6254_s5, 4 }
 0x16c   : > { %p4533_p5 = scmp.ne.s32.totalorder %s4531_s10, %s4532_s15  ;;  %p4537_p8 = scmp.lt.s32.totalorder %s4531_s10, %s6254_s5 }
 0x16d   : > { %p4538_p9 = scmp.lt.s32.totalorder %s4536_s11, %s4532_s15 }
 0x16e   : > { %s1343_s3 = sshll.u32 %s6255_s7, 4  ;;  %p4534_p6 = pnand %p4533_p5, %p3811_p3  ;;  %s5778_s3 = int_to_ptr.hbm [resolvable:$true] %s1343_s3 }
 0x16f   : > { %p4539_p10 = por %p4538_p9, %p4537_p8 }
 0x170   : > { %p4535_p7 = pneg %p4534_p6 }
 0x172   : > { %p4540_p11 = pnand %p4539_p10, %p4535_p7 }
 0x174   : > { %4543 = shalt.err (!%p4540_p11)
}
 0x175   : > { %s6256_s19 = sld [smem:[#allocation90_spill]]  ;;  %s5279_s2 = smov [#allocation6]  }
 0x176   : > { %3652 = dma.hbm_to_vmem [thread:$0]  (%p3811_p3), %s1317_s9, 64, %s1319_s23, [#allocation3]  }
 0x177   : > { %s1345_s1 = sshll.u32 %s5279_s2, 4  ;;  %s4558_s8 = sshra.s32 %s5778_s3, 4  ;;  %s1346_s1 = int_to_ptr.vmem [resolvable:$true] %s1345_s1  ;;  %s4559_s8 = int_to_ptr.hbm [resolvable:$true] %s4558_s8 }
 0x178   : > { %s4560_s10 = scalar_lea.hbm %s4559_s8, 4  ;;  %s4564_s15 = scalar_lea.hbm %s6255_s7, 4 }
 0x179   : > { %p4561_p12 = scmp.ne.s32.totalorder %s4559_s8, %s4560_s10  ;;  %p4565_p1 = scmp.lt.s32.totalorder %s4559_s8, %s6255_s7 }
 0x17a   : > { %p4566_p4 = scmp.lt.s32.totalorder %s4564_s15, %s4560_s10 }
 0x17b   : > { %s1370_s12 = sshll.u32 %s6256_s19, 4  ;;  %p4562_p13 = pnand %p4561_p12, %p3811_p3  ;;  %s5787_s12 = int_to_ptr.hbm [resolvable:$true] %s1370_s12 }
 0x17c   : > { %p4567_p5 = por %p4566_p4, %p4565_p1 }
 0x17d   : > { %p4563_p0 = pneg %p4562_p13 }
 0x17f   : > { %p4568_p6 = pnand %p4567_p5, %p4563_p0 }
 0x181   : > { %4571 = shalt.err (!%p4568_p6)
}
 0x182   : > { %s6257_s9 = sld [smem:[#allocation92_spill]]  ;;  %s5280_s23 = smov [#allocation9]  }
 0x183   : > { %3656 = dma.hbm_to_vmem [thread:$0]  (%p3811_p3), %s5778_s3, 64, %s1346_s1, [#allocation5]  }
 0x184   : > { %s1372_s11 = sshll.u32 %s5280_s23, 4  ;;  %s4586_s8 = sshra.s32 %s5787_s12, 4  ;;  %s1373_s11 = int_to_ptr.vmem [resolvable:$true] %s1372_s11  ;;  %s4587_s8 = int_to_ptr.hbm [resolvable:$true] %s4586_s8 }
 0x185   : > { %s4588_s10 = scalar_lea.hbm %s4587_s8, 1  ;;  %s4592_s15 = scalar_lea.hbm %s6256_s19, 1 }
 0x186   : > { %p4589_p7 = scmp.ne.s32.totalorder %s4587_s8, %s4588_s10  ;;  %p4593_p10 = scmp.lt.s32.totalorder %s4587_s8, %s6256_s19 }
 0x187   : > { %p4594_p11 = scmp.lt.s32.totalorder %s4592_s15, %s4588_s10 }
 0x188   : > { %s1400_s2 = sshll.u32 %s6257_s9, 4  ;;  %p4590_p8 = pnand %p4589_p7, %p3811_p3  ;;  %s5798_s2 = int_to_ptr.hbm [resolvable:$true] %s1400_s2 }
 0x189   : > { %p4595_p12 = por %p4594_p11, %p4593_p10 }
 0x18a   : > { %p4591_p9 = pneg %p4590_p8 }
 0x18c   : > { %p4596_p13 = pnand %p4595_p12, %p4591_p9 }
 0x18e   : > { %4599 = shalt.err (!%p4596_p13)
}
 0x18f   : > { %s6258_s1 = sld [smem:[#allocation93_spill]]  ;;  %s5281_s23 = smov [#allocation12]  }
 0x190   : > { %3660 = dma.hbm_to_vmem [thread:$0]  (%p3811_p3), %s5787_s12, 16, %s1373_s11, [#allocation8]  }
 0x191   : > { %s1402_s5 = sshll.u32 %s5281_s23, 4  ;;  %s4614_s8 = sshra.s32 %s5798_s2, 4  ;;  %s1403_s5 = int_to_ptr.vmem [resolvable:$true] %s1402_s5  ;;  %s4615_s8 = int_to_ptr.hbm [resolvable:$true] %s4614_s8 }
 0x192   : > { %s4616_s10 = scalar_lea.hbm %s4615_s8, 1  ;;  %s4620_s15 = scalar_lea.hbm %s6257_s9, 1 }
 0x193   : > { %p4617_p0 = scmp.ne.s32.totalorder %s4615_s8, %s4616_s10  ;;  %p4621_p5 = scmp.lt.s32.totalorder %s4615_s8, %s6257_s9 }
 0x194   : > { %p4622_p6 = scmp.lt.s32.totalorder %s4620_s15, %s4616_s10 }
 0x195   : > { %s1426_s3 = sshll.u32 %s6258_s1, 4  ;;  %p4618_p1 = pnand %p4617_p0, %p3811_p3  ;;  %s5809_s3 = int_to_ptr.hbm [resolvable:$true] %s1426_s3 }
 0x196   : > { %p4623_p7 = por %p4622_p6, %p4621_p5 }
 0x197   : > { %p4619_p4 = pneg %p4618_p1 }
 0x199   : > { %p4624_p8 = pnand %p4623_p7, %p4619_p4 }
 0x19b   : > { %4627 = shalt.err (!%p4624_p8)
}
 0x19c   : > { %s6259_s12 = sld [smem:[#allocation95_spill]]  ;;  %s5282_s11 = smov [#allocation15]  }
 0x19d   : > { %3664 = dma.hbm_to_vmem [thread:$0]  (%p3811_p3), %s5798_s2, 16, %s1403_s5, [#allocation11]  }
 0x19e   : > { %s1428_s23 = sshll.u32 %s5282_s11, 4  ;;  %s4642_s8 = sshra.s32 %s5809_s3, 4  ;;  %s1429_s23 = int_to_ptr.vmem [resolvable:$true] %s1428_s23  ;;  %s4643_s8 = int_to_ptr.hbm [resolvable:$true] %s4642_s8 }
 0x19f   : > { %s4644_s10 = scalar_lea.hbm %s4643_s8, 1  ;;  %s4648_s15 = scalar_lea.hbm %s6258_s1, 1 }
 0x1a0   : > { %p4645_p9 = scmp.ne.s32.totalorder %s4643_s8, %s4644_s10  ;;  %p4649_p12 = scmp.lt.s32.totalorder %s4643_s8, %s6258_s1 }
 0x1a1   : > { %p4650_p13 = scmp.lt.s32.totalorder %s4648_s15, %s4644_s10 }
 0x1a2   : > { %s1458_s7 = sshll.u32 %s6259_s12, 4  ;;  %p4646_p10 = pnand %p4645_p9, %p3811_p3  ;;  %s5820_s7 = int_to_ptr.hbm [resolvable:$true] %s1458_s7 }
 0x1a3   : > { %p4651_p0 = por %p4650_p13, %p4649_p12 }
 0x1a4   : > { %p4647_p11 = pneg %p4646_p10 }
 0x1a6   : > { %p4652_p1 = pnand %p4651_p0, %p4647_p11 }
 0x1a8   : > { %4655 = shalt.err (!%p4652_p1)
}
 0x1a9   : > { %s6260_s5 = sld [smem:[#allocation96_spill]]  ;;  %s5283_s11 = smov [#allocation18]  }
 0x1aa   : > { %3668 = dma.hbm_to_vmem [thread:$0]  (%p3811_p3), %s5809_s3, 16, %s1429_s23, [#allocation14]  }
 0x1ab   : > { %s1460_s9 = sshll.u32 %s5283_s11, 4  ;;  %s4670_s8 = sshra.s32 %s5820_s7, 4  ;;  %s1461_s9 = int_to_ptr.vmem [resolvable:$true] %s1460_s9  ;;  %s4671_s8 = int_to_ptr.hbm [resolvable:$true] %s4670_s8 }
 0x1ac   : > { %s4672_s10 = scalar_lea.hbm %s4671_s8, 1  ;;  %s4676_s15 = scalar_lea.hbm %s6259_s12, 1 }
 0x1ad   : > { %p4673_p4 = scmp.ne.s32.totalorder %s4671_s8, %s4672_s10  ;;  %p4677_p7 = scmp.lt.s32.totalorder %s4671_s8, %s6259_s12 }
 0x1ae   : > { %p4678_p8 = scmp.lt.s32.totalorder %s4676_s15, %s4672_s10 }
 0x1af   : > { %s1484_s2 = sshll.u32 %s6260_s5, 4  ;;  %p4674_p5 = pnand %p4673_p4, %p3811_p3  ;;  %s5831_s2 = int_to_ptr.hbm [resolvable:$true] %s1484_s2 }
 0x1b0   : > { %p4679_p9 = por %p4678_p8, %p4677_p7 }
 0x1b1   : > { %p4675_p6 = pneg %p4674_p5 }
 0x1b3   : > { %p4680_p10 = pnand %p4679_p9, %p4675_p6 }
 0x1b5   : > { %4683 = shalt.err (!%p4680_p10)
}
 0x1b6   : > { %s6261_s3 = sld [smem:[#allocation98_spill]]  ;;  %s5284_s23 = smov [#allocation21]  }
 0x1b7   : > { %3672 = dma.hbm_to_vmem [thread:$0]  (%p3811_p3), %s5820_s7, 16, %s1461_s9, [#allocation17]  }
 0x1b8   : > { %s1486_s11 = sshll.u32 %s5284_s23, 4  ;;  %s4698_s8 = sshra.s32 %s5831_s2, 4  ;;  %s1487_s11 = int_to_ptr.vmem [resolvable:$true] %s1486_s11  ;;  %s4699_s8 = int_to_ptr.hbm [resolvable:$true] %s4698_s8 }
 0x1b9   : > { %s4700_s10 = scalar_lea.hbm %s4699_s8, 1  ;;  %s4704_s15 = scalar_lea.hbm %s6260_s5, 1 }
 0x1ba   : > { %p4701_p11 = scmp.ne.s32.totalorder %s4699_s8, %s4700_s10  ;;  %p4705_p0 = scmp.lt.s32.totalorder %s4699_s8, %s6260_s5 }
 0x1bb   : > { %p4706_p1 = scmp.lt.s32.totalorder %s4704_s15, %s4700_s10 }
 0x1bc   : > { %s1510_s1 = sshll.u32 %s6261_s3, 4  ;;  %p4702_p12 = pnand %p4701_p11, %p3811_p3  ;;  %s5842_s1 = int_to_ptr.hbm [resolvable:$true] %s1510_s1 }
 0x1bd   : > { %p4707_p4 = por %p4706_p1, %p4705_p0 }
 0x1be   : > { %p4703_p13 = pneg %p4702_p12 }
 0x1c0   : > { %p4708_p5 = pnand %p4707_p4, %p4703_p13 }
 0x1c2   : > { %4711 = shalt.err (!%p4708_p5)
}
 0x1c3   : > { %s6262_s7 = sld [smem:[#allocation100_spill]]  ;;  %s5285_s23 = smov [#allocation24]  }
 0x1c4   : > { %3676 = dma.hbm_to_vmem [thread:$0]  (%p3811_p3), %s5831_s2, 16, %s1487_s11, [#allocation20]  }
 0x1c5   : > { %s1512_s12 = sshll.u32 %s5285_s23, 4  ;;  %s4726_s8 = sshra.s32 %s5842_s1, 4  ;;  %s1513_s12 = int_to_ptr.vmem [resolvable:$true] %s1512_s12  ;;  %s4727_s8 = int_to_ptr.hbm [resolvable:$true] %s4726_s8 }
 0x1c6   : > { %s4728_s10 = scalar_lea.hbm %s4727_s8, 12  ;;  %s4732_s15 = scalar_lea.hbm %s6261_s3, 12 }
 0x1c7   : > { %p4729_p6 = scmp.ne.s32.totalorder %s4727_s8, %s4728_s10  ;;  %p4733_p9 = scmp.lt.s32.totalorder %s4727_s8, %s6261_s3 }
 0x1c8   : > { %p4734_p10 = scmp.lt.s32.totalorder %s4732_s15, %s4728_s10 }
 0x1c9   : > { %s1536_s9 = sshll.u32 %s6262_s7, 4  ;;  %p4730_p7 = pnand %p4729_p6, %p3811_p3  ;;  %s5853_s9 = int_to_ptr.hbm [resolvable:$true] %s1536_s9 }
 0x1ca   : > { %p4735_p11 = por %p4734_p10, %p4733_p9 }
 0x1cb   : > { %p4731_p8 = pneg %p4730_p7 }
 0x1cd   : > { %p4736_p12 = pnand %p4735_p11, %p4731_p8 }
 0x1cf   : > { %4739 = shalt.err (!%p4736_p12)
}
 0x1d0   : > { %s6263_s2 = sld [smem:[#allocation102_spill]]  ;;  %s5286_s11 = smov [#allocation27]  }
 0x1d1   : > { %3680 = dma.hbm_to_vmem [thread:$0]  (%p3811_p3), %s5842_s1, 192, %s1513_s12, [#allocation23], %s6248_s24, %s6248_s24, %s6252_s4  }
 0x1d2   : > { %s1538_s23 = sshll.u32 %s5286_s11, 4  ;;  %s4754_s8 = sshra.s32 %s5853_s9, 4  ;;  %s1539_s23 = int_to_ptr.vmem [resolvable:$true] %s1538_s23  ;;  %s4755_s8 = int_to_ptr.hbm [resolvable:$true] %s4754_s8 }
 0x1d3   : > { %s4756_s10 = scalar_lea.hbm %s4755_s8, 192  ;;  %s4760_s15 = scalar_lea.hbm %s6262_s7, 192 }
 0x1d4   : > { %p4757_p13 = scmp.ne.s32.totalorder %s4755_s8, %s4756_s10  ;;  %p4761_p4 = scmp.lt.s32.totalorder %s4755_s8, %s6262_s7 }
 0x1d5   : > { %p4762_p5 = scmp.lt.s32.totalorder %s4760_s15, %s4756_s10 }
 0x1d6   : > { %s1562_s5 = sshll.u32 %s6263_s2, 4  ;;  %p4758_p0 = pnand %p4757_p13, %p3811_p3  ;;  %s5867_s5 = int_to_ptr.hbm [resolvable:$true] %s1562_s5 }
 0x1d7   : > { %p4763_p6 = por %p4762_p5, %p4761_p4 }
 0x1d8   : > { %p4759_p1 = pneg %p4758_p0 }
 0x1da   : > { %p4764_p7 = pnand %p4763_p6, %p4759_p1 }
 0x1dc   : > { %4767 = shalt.err (!%p4764_p7)
}
 0x1dd   : > { %s6264_s1 = sld [smem:[#allocation103_spill]]  ;;  %s5287_s11 = smov [#allocation30]  }
 0x1de   : > { %3684 = dma.hbm_to_vmem [thread:$0]  (%p3811_p3), %s5853_s9, 3072, %s1539_s23, [#allocation26], %s6248_s24, %s6248_s24, %s6252_s4  }
 0x1df   : > { %s1564_s3 = sshll.u32 %s5287_s11, 4  ;;  %s4782_s8 = sshra.s32 %s5867_s5, 4  ;;  %s1565_s3 = int_to_ptr.vmem [resolvable:$true] %s1564_s3  ;;  %s4783_s8 = int_to_ptr.hbm [resolvable:$true] %s4782_s8 }
 0x1e0   : > { %s4784_s10 = scalar_lea.hbm %s4783_s8, 64  ;;  %s4788_s15 = scalar_lea.hbm %s6263_s2, 64 }
 0x1e1   : > { %p4785_p8 = scmp.ne.s32.totalorder %s4783_s8, %s4784_s10  ;;  %p4789_p11 = scmp.lt.s32.totalorder %s4783_s8, %s6263_s2 }
 0x1e2   : > { %p4790_p12 = scmp.lt.s32.totalorder %s4788_s15, %s4784_s10 }
 0x1e3   : > { %s1589_s12 = sshll.u32 %s6264_s1, 4  ;;  %p4786_p9 = pnand %p4785_p8, %p3811_p3  ;;  %s5881_s12 = int_to_ptr.hbm [resolvable:$true] %s1589_s12 }
 0x1e4   : > { %p4791_p13 = por %p4790_p12, %p4789_p11 }
 0x1e5   : > { %p4787_p10 = pneg %p4786_p9 }
 0x1e7   : > { %p4792_p0 = pnand %p4791_p13, %p4787_p10 }
 0x1e9   : > { %4795 = shalt.err (!%p4792_p0)
}
 0x1ea   : > { %s6265_s9 = sld [smem:[#allocation104_spill]]  ;;  %s5288_s23 = smov [#allocation33]  }
 0x1eb   : > { %3688 = dma.hbm_to_vmem [thread:$0]  (%p3811_p3), %s5867_s5, 1024, %s1565_s3, [#allocation29], %s6248_s24, %s6248_s24, %s6252_s4  }
 0x1ec   : > { %s1591_s11 = sshll.u32 %s5288_s23, 4  ;;  %s4810_s8 = sshra.s32 %s5881_s12, 4  ;;  %s1592_s11 = int_to_ptr.vmem [resolvable:$true] %s1591_s11  ;;  %s4811_s8 = int_to_ptr.hbm [resolvable:$true] %s4810_s8 }
 0x1ed   : > { %s4812_s10 = scalar_lea.hbm %s4811_s8, 1  ;;  %s4816_s15 = scalar_lea.hbm %s6264_s1, 1 }
 0x1ee   : > { %p4813_p1 = scmp.ne.s32.totalorder %s4811_s8, %s4812_s10  ;;  %p4817_p6 = scmp.lt.s32.totalorder %s4811_s8, %s6264_s1 }
 0x1ef   : > { %p4818_p7 = scmp.lt.s32.totalorder %s4816_s15, %s4812_s10 }
 0x1f0   : > { %s1615_s7 = sshll.u32 %s6265_s9, 4  ;;  %p4814_p4 = pnand %p4813_p1, %p3811_p3  ;;  %s5895_s7 = int_to_ptr.hbm [resolvable:$true] %s1615_s7 }
 0x1f1   : > { %p4819_p8 = por %p4818_p7, %p4817_p6 }
 0x1f2   : > { %p4815_p5 = pneg %p4814_p4 }
 0x1f4   : > { %p4820_p9 = pnand %p4819_p8, %p4815_p5 }
 0x1f6   : > { %4823 = shalt.err (!%p4820_p9)
}
 0x1f7   : > { %s6266_s5 = sld [smem:[#allocation106_spill]]  ;;  %s5289_s23 = smov [#allocation36]  }
 0x1f8   : > { %3692 = dma.hbm_to_vmem [thread:$0]  (%p3811_p3), %s5881_s12, 16, %s1592_s11, [#allocation32]  }
 0x1f9   : > { %s1617_s2 = sshll.u32 %s5289_s23, 4  ;;  %s4838_s8 = sshra.s32 %s5895_s7, 4  ;;  %s1618_s2 = int_to_ptr.vmem [resolvable:$true] %s1617_s2  ;;  %s4839_s8 = int_to_ptr.hbm [resolvable:$true] %s4838_s8 }
 0x1fa   : > { %s4840_s10 = scalar_lea.hbm %s4839_s8, 1  ;;  %s4844_s15 = scalar_lea.hbm %s6265_s9, 1 }
 0x1fb   : > { %p4841_p10 = scmp.ne.s32.totalorder %s4839_s8, %s4840_s10  ;;  %p4845_p13 = scmp.lt.s32.totalorder %s4839_s8, %s6265_s9 }
 0x1fc   : > { %p4846_p0 = scmp.lt.s32.totalorder %s4844_s15, %s4840_s10 }
 0x1fd   : > { %s1638_s3 = sshll.u32 %s6266_s5, 4  ;;  %p4842_p11 = pnand %p4841_p10, %p3811_p3  ;;  %s5906_s3 = int_to_ptr.hbm [resolvable:$true] %s1638_s3 }
 0x1fe   : > { %p4847_p1 = por %p4846_p0, %p4845_p13 }
 0x1ff   : > { %p4843_p12 = pneg %p4842_p11 }
 0x201   : > { %p4848_p4 = pnand %p4847_p1, %p4843_p12 }
 0x203   : > { %4851 = shalt.err (!%p4848_p4)
}
 0x204   : > { %s6267_s12 = sld [smem:[#allocation107_spill]]  ;;  %s5290_s11 = smov [#allocation39]  }
 0x205   : > { %3696 = dma.hbm_to_vmem [thread:$0]  (%p3811_p3), %s5895_s7, 16, %s1618_s2, [#allocation35]  }
 0x206   : > { %s1640_s23 = sshll.u32 %s5290_s11, 4  ;;  %s4866_s8 = sshra.s32 %s5906_s3, 4  ;;  %s1641_s23 = int_to_ptr.vmem [resolvable:$true] %s1640_s23  ;;  %s4867_s8 = int_to_ptr.hbm [resolvable:$true] %s4866_s8 }
 0x207   : > { %s4868_s10 = scalar_lea.hbm %s4867_s8, 64  ;;  %s4872_s15 = scalar_lea.hbm %s6266_s5, 64 }
 0x208   : > { %p4869_p5 = scmp.ne.s32.totalorder %s4867_s8, %s4868_s10  ;;  %p4873_p8 = scmp.lt.s32.totalorder %s4867_s8, %s6266_s5 }
 0x209   : > { %p4874_p9 = scmp.lt.s32.totalorder %s4872_s15, %s4868_s10 }
 0x20a   : > { %s1665_s1 = sshll.u32 %s6267_s12, 4  ;;  %p4870_p6 = pnand %p4869_p5, %p3811_p3  ;;  %s5917_s1 = int_to_ptr.hbm [resolvable:$true] %s1665_s1 }
 0x20b   : > { %p4875_p10 = por %p4874_p9, %p4873_p8 }
 0x20c   : > { %p4871_p7 = pneg %p4870_p6 }
 0x20e   : > { %p4876_p11 = pnand %p4875_p10, %p4871_p7 }
 0x210   : > { %4879 = shalt.err (!%p4876_p11)
}
 0x211   : > { %s6268_s7 = sld [smem:[#allocation109_spill]]  ;;  %s5291_s11 = smov [#allocation42]  }
 0x212   : > { %3700 = dma.hbm_to_vmem [thread:$0]  (%p3811_p3), %s5906_s3, 1024, %s1641_s23, [#allocation38], %s6248_s24, %s6248_s24, %s6252_s4  }
 0x213   : > { %s1667_s9 = sshll.u32 %s5291_s11, 4  ;;  %s4894_s8 = sshra.s32 %s5917_s1, 4  ;;  %s1668_s9 = int_to_ptr.vmem [resolvable:$true] %s1667_s9  ;;  %s4895_s8 = int_to_ptr.hbm [resolvable:$true] %s4894_s8 }
 0x214   : > { %s4896_s10 = scalar_lea.hbm %s4895_s8, 1  ;;  %s4900_s15 = scalar_lea.hbm %s6267_s12, 1 }
 0x215   : > { %p4897_p12 = scmp.ne.s32.totalorder %s4895_s8, %s4896_s10  ;;  %p4901_p1 = scmp.lt.s32.totalorder %s4895_s8, %s6267_s12 }
 0x216   : > { %p4902_p4 = scmp.lt.s32.totalorder %s4900_s15, %s4896_s10 }
 0x217   : > { %s1691_s2 = sshll.u32 %s6268_s7, 4  ;;  %p4898_p13 = pnand %p4897_p12, %p3811_p3  ;;  %s5931_s2 = int_to_ptr.hbm [resolvable:$true] %s1691_s2 }
 0x218   : > { %p4903_p5 = por %p4902_p4, %p4901_p1 }
 0x219   : > { %p4899_p0 = pneg %p4898_p13 }
 0x21b   : > { %p4904_p6 = pnand %p4903_p5, %p4899_p0 }
 0x21d   : > { %4907 = shalt.err (!%p4904_p6)
}
 0x21e   : > { %s6269_s3 = sld [smem:[#allocation111_spill]]  ;;  %s5292_s23 = smov [#allocation45]  }
 0x21f   : > { %3704 = dma.hbm_to_vmem [thread:$0]  (%p3811_p3), %s5917_s1, 16, %s1668_s9, [#allocation41]  }
 0x220   : > { %s1693_s11 = sshll.u32 %s5292_s23, 4  ;;  %s4922_s8 = sshra.s32 %s5931_s2, 4  ;;  %s1694_s11 = int_to_ptr.vmem [resolvable:$true] %s1693_s11  ;;  %s4923_s8 = int_to_ptr.hbm [resolvable:$true] %s4922_s8 }
 0x221   : > { %s4924_s10 = scalar_lea.hbm %s4923_s8, 1  ;;  %s4928_s15 = scalar_lea.hbm %s6268_s7, 1 }
 0x222   : > { %p4925_p7 = scmp.ne.s32.totalorder %s4923_s8, %s4924_s10  ;;  %p4929_p10 = scmp.lt.s32.totalorder %s4923_s8, %s6268_s7 }
 0x223   : > { %p4930_p11 = scmp.lt.s32.totalorder %s4928_s15, %s4924_s10 }
 0x224   : > { %s1714_s5 = sshll.u32 %s6269_s3, 4  ;;  %p4926_p8 = pnand %p4925_p7, %p3811_p3  ;;  %s5942_s5 = int_to_ptr.hbm [resolvable:$true] %s1714_s5 }
 0x225   : > { %p4931_p12 = por %p4930_p11, %p4929_p10 }
 0x226   : > { %p4927_p9 = pneg %p4926_p8 }
 0x228   : > { %p4932_p13 = pnand %p4931_p12, %p4927_p9 }
 0x22a   : > { %4935 = shalt.err (!%p4932_p13)
}
 0x22b   : > { %s6270_s1 = sld [smem:[#allocation113_spill]]  ;;  %s5293_s23 = smov [#allocation48]  }
 0x22c   : > { %3708 = dma.hbm_to_vmem [thread:$0]  (%p3811_p3), %s5931_s2, 16, %s1694_s11, [#allocation44]  }
 0x22d   : > { %s1716_s12 = sshll.u32 %s5293_s23, 4  ;;  %s4950_s8 = sshra.s32 %s5942_s5, 4  ;;  %s1717_s12 = int_to_ptr.vmem [resolvable:$true] %s1716_s12  ;;  %s4951_s8 = int_to_ptr.hbm [resolvable:$true] %s4950_s8 }
 0x22e   : > { %s4952_s10 = scalar_lea.hbm %s4951_s8, 64  ;;  %s4956_s15 = scalar_lea.hbm %s6269_s3, 64 }
 0x22f   : > { %p4953_p0 = scmp.ne.s32.totalorder %s4951_s8, %s4952_s10  ;;  %p4957_p5 = scmp.lt.s32.totalorder %s4951_s8, %s6269_s3 }
 0x230   : > { %p4958_p6 = scmp.lt.s32.totalorder %s4956_s15, %s4952_s10 }
 0x231   : > { %s1741_s9 = sshll.u32 %s6270_s1, 4  ;;  %p4954_p1 = pnand %p4953_p0, %p3811_p3  ;;  %s5953_s9 = int_to_ptr.hbm [resolvable:$true] %s1741_s9 }
 0x232   : > { %p4959_p7 = por %p4958_p6, %p4957_p5 }
 0x233   : > { %p4955_p4 = pneg %p4954_p1 }
 0x235   : > { %p4960_p8 = pnand %p4959_p7, %p4955_p4 }
 0x237   : > { %4963 = shalt.err (!%p4960_p8)
}
 0x238   : > { %s6271_s2 = sld [smem:[#allocation115_spill]]  ;;  %s5294_s11 = smov [#allocation51]  }
 0x239   : > { %3712 = dma.hbm_to_vmem [thread:$0]  (%p3811_p3), %s5942_s5, 1024, %s1717_s12, [#allocation47], %s6248_s24, %s6248_s24, %s6252_s4  }
 0x23a   : > { %s1743_s23 = sshll.u32 %s5294_s11, 4  ;;  %s4978_s8 = sshra.s32 %s5953_s9, 4  ;;  %s1744_s23 = int_to_ptr.vmem [resolvable:$true] %s1743_s23  ;;  %s4979_s8 = int_to_ptr.hbm [resolvable:$true] %s4978_s8 }
 0x23b   : > { %s4980_s10 = scalar_lea.hbm %s4979_s8, 1  ;;  %s4984_s15 = scalar_lea.hbm %s6270_s1, 1 }
 0x23c   : > { %p4981_p9 = scmp.ne.s32.totalorder %s4979_s8, %s4980_s10  ;;  %p4985_p12 = scmp.lt.s32.totalorder %s4979_s8, %s6270_s1 }
 0x23d   : > { %p4986_p13 = scmp.lt.s32.totalorder %s4984_s15, %s4980_s10 }
 0x23e   : > { %s1767_s7 = sshll.u32 %s6271_s2, 4  ;;  %p4982_p10 = pnand %p4981_p9, %p3811_p3  ;;  %s5967_s7 = int_to_ptr.hbm [resolvable:$true] %s1767_s7 }
 0x23f   : > { %p4987_p0 = por %p4986_p13, %p4985_p12 }
 0x240   : > { %p4983_p11 = pneg %p4982_p10 }
 0x242   : > { %p4988_p1 = pnand %p4987_p0, %p4983_p11 }
 0x244   : > { %4991 = shalt.err (!%p4988_p1)
}
 0x245   : > { %s6272_s5 = sld [smem:[#allocation117_spill]]  ;;  %s5295_s11 = smov [#allocation54]  }
 0x246   : > { %3716 = dma.hbm_to_vmem [thread:$0]  (%p3811_p3), %s5953_s9, 16, %s1744_s23, [#allocation50]  }
 0x247   : > { %s1769_s3 = sshll.u32 %s5295_s11, 4  ;;  %s5006_s8 = sshra.s32 %s5967_s7, 4  ;;  %s1770_s3 = int_to_ptr.vmem [resolvable:$true] %s1769_s3  ;;  %s5007_s8 = int_to_ptr.hbm [resolvable:$true] %s5006_s8 }
 0x248   : > { %s5008_s10 = scalar_lea.hbm %s5007_s8, 1  ;;  %s5012_s15 = scalar_lea.hbm %s6271_s2, 1 }
 0x249   : > { %p5009_p4 = scmp.ne.s32.totalorder %s5007_s8, %s5008_s10  ;;  %p5013_p7 = scmp.lt.s32.totalorder %s5007_s8, %s6271_s2 }
 0x24a   : > { %p5014_p8 = scmp.lt.s32.totalorder %s5012_s15, %s5008_s10 }
 0x24b   : > { %s1790_s12 = sshll.u32 %s6272_s5, 4  ;;  %p5010_p5 = pnand %p5009_p4, %p3811_p3  ;;  %s5978_s12 = int_to_ptr.hbm [resolvable:$true] %s1790_s12 }
 0x24c   : > { %p5015_p9 = por %p5014_p8, %p5013_p7 }
 0x24d   : > { %p5011_p6 = pneg %p5010_p5 }
 0x24f   : > { %p5016_p10 = pnand %p5015_p9, %p5011_p6 }
 0x251   : > { %5019 = shalt.err (!%p5016_p10)
}
 0x252   : > { %s6273_s9 = sld [smem:[#allocation119_spill]]  ;;  %s5296_s23 = smov [#allocation57]  }
 0x253   : > { %3720 = dma.hbm_to_vmem [thread:$0]  (%p3811_p3), %s5967_s7, 16, %s1770_s3, [#allocation53]  }
 0x254   : > { %s1792_s11 = sshll.u32 %s5296_s23, 4  ;;  %s5034_s8 = sshra.s32 %s5978_s12, 4  ;;  %s1793_s11 = int_to_ptr.vmem [resolvable:$true] %s1792_s11  ;;  %s5035_s8 = int_to_ptr.hbm [resolvable:$true] %s5034_s8 }
 0x255   : > { %s5036_s10 = scalar_lea.hbm %s5035_s8, 64  ;;  %s5040_s15 = scalar_lea.hbm %s6272_s5, 64 }
 0x256   : > { %p5037_p11 = scmp.ne.s32.totalorder %s5035_s8, %s5036_s10  ;;  %p5041_p0 = scmp.lt.s32.totalorder %s5035_s8, %s6272_s5 }
 0x257   : > { %p5042_p1 = scmp.lt.s32.totalorder %s5040_s15, %s5036_s10 }
 0x258   : > { %s1816_s1 = sshll.u32 %s6273_s9, 4  ;;  %p5038_p12 = pnand %p5037_p11, %p3811_p3  ;;  %s5989_s1 = int_to_ptr.hbm [resolvable:$true] %s1816_s1 }
 0x259   : > { %p5043_p4 = por %p5042_p1, %p5041_p0 }
 0x25a   : > { %p5039_p13 = pneg %p5038_p12 }
 0x25c   : > { %p5044_p5 = pnand %p5043_p4, %p5039_p13 }
 0x25e   : > { %5047 = shalt.err (!%p5044_p5)
}
 0x25f   : > { %3724 = dma.hbm_to_vmem [thread:$0]  (%p3811_p3), %s5978_s12, 1024, %s1793_s11, [#allocation56], %s6248_s24, %s6248_s24, %s6252_s4  }
 0x260   : > { %s1831_s7 = sshll.u32 %s5523_s14, 4  ;;  %s5297_s3 = smov [#allocation60]   ;;  %s6003_s7 = int_to_ptr.hbm [resolvable:$true] %s1831_s7 }
 0x261   : > { %s1818_s23 = sshll.u32 %s5297_s3, 4  ;;  %s5062_s8 = sshra.s32 %s5989_s1, 4  ;;  %s1819_s23 = int_to_ptr.vmem [resolvable:$true] %s1818_s23  ;;  %s5063_s8 = int_to_ptr.hbm [resolvable:$true] %s5062_s8 }
 0x262   : > { %s5064_s10 = scalar_lea.hbm %s5063_s8, 48  ;;  %s5068_s15 = scalar_lea.hbm %s6273_s9, 48 }
 0x263   : > { %p5065_p6 = scmp.ne.s32.totalorder %s5063_s8, %s5064_s10  ;;  %p5069_p9 = scmp.lt.s32.totalorder %s5063_s8, %s6273_s9 }
 0x264   : > { %p5070_p10 = scmp.lt.s32.totalorder %s5068_s15, %s5064_s10 }
 0x265   : > { %p5066_p7 = pnand %p5065_p6, %p3811_p3 }
 0x266   : > { %p5071_p11 = por %p5070_p10, %p5069_p9 }
 0x267   : > { %p5067_p8 = pneg %p5066_p7 }
 0x269   : > { %p5072_p12 = pnand %p5071_p11, %p5067_p8 }
 0x26b   : > { %5075 = shalt.err (!%p5072_p12)
}
 0x26c   : > { %3728 = dma.hbm_to_vmem [thread:$0]  (%p3811_p3), %s5989_s1, 768, %s1819_s23, [#allocation59], %s6248_s24, %s6248_s24, %s6252_s4  }
 0x26d   : > { %s5298_s12 = smov [#allocation61]   ;;  %s5090_s3 = sshra.s32 %s6003_s7, 4  ;;  %s5091_s3 = int_to_ptr.hbm [resolvable:$true] %s5090_s3 }
 0x26e   : > { %s1833_s11 = sshll.u32 %s5298_s12, 4  ;;  %s5092_s8 = scalar_lea.hbm %s5091_s3, 1  ;;  %s1834_s11 = int_to_ptr.vmem [resolvable:$true] %s1833_s11 }
 0x26f   : > { %p5093_p13 = scmp.ne.s32.totalorder %s5091_s3, %s5092_s8  ;;  %s5096_s10 = scalar_lea.hbm %s5523_s14, 1 }
 0x270   : > { %p5097_p4 = scmp.lt.s32.totalorder %s5091_s3, %s5523_s14  ;;  %p5098_p5 = scmp.lt.s32.totalorder %s5096_s10, %s5092_s8 }
 0x271   : > { %p5094_p0 = pnand %p5093_p13, %p3811_p3 }
 0x272   : > { %p5099_p6 = por %p5098_p5, %p5097_p4 }
 0x273   : > { %p5095_p1 = pneg %p5094_p0 }
 0x275   : > { %p5100_p7 = pnand %p5099_p6, %p5095_p1 }
 0x277   : > { %5103 = shalt.err (!%p5100_p7)
}
 0x278   : > { %3730 = dma.hbm_to_vmem [thread:$0]  (%p3811_p3), %s6003_s7, 16, %s1834_s11, [#allocation62]  }
 0x279 PF: > { %1857 = sbr.rel (%p5550_p2) target bundleno = 1158 (0x486), region = 224  ;;  %p3851_p8 = scmp.eq.s32.totalorder (!%p5550_p2), %s5546_s16, 0 }
 0x27e   : > { %5123 = dma.done.wait (%p3851_p8), [#allocation3], 64  }
 0x27f   : > { %5125 = vsyncadd (%p3851_p8), [#allocation3], 4294967232 }
 0x280   : > { %5127 = dma.done.wait (%p3851_p8), [#allocation5], 80  }
 0x281   : > { %5129 = vsyncadd (%p3851_p8), [#allocation5], 4294967216 }
 0x282   : > { %5131 = dma.done.wait (%p3851_p8), [#allocation8], 32  }
 0x283   : > { %5133 = vsyncadd (%p3851_p8), [#allocation8], 4294967264 }
 0x284   : > { %5135 = dma.done.wait (%p3851_p8), [#allocation11], 32  }
 0x285   : > { %5137 = vsyncadd (%p3851_p8), [#allocation11], 4294967264 }
 0x286   : > { %5139 = dma.done.wait (%p3851_p8), [#allocation14], 400  }
 0x287   : > { %5141 = vsyncadd (%p3851_p8), [#allocation14], 4294966896 }
 0x288   : > { %5143 = dma.done.wait (%p3851_p8), [#allocation17], 1040  }
 0x289   : > { %5145 = vsyncadd (%p3851_p8), [#allocation17], 4294966256 }
 0x28a   : > { %5147 = dma.done.wait (%p3851_p8), [#allocation20], 208  }
 0x28b   : > { %5149 = vsyncadd (%p3851_p8), [#allocation20], 4294967088 }
 0x28c   : > { %5151 = dma.done.wait (%p3851_p8), [#allocation23], 208  }
 0x28d   : > { %5153 = vsyncadd (%p3851_p8), [#allocation23], 4294967088 }
 0x28e   : > { %5155 = dma.done.wait (%p3851_p8), [#allocation26], 3088  }
 0x28f   : > { %5157 = vsyncadd (%p3851_p8), [#allocation26], 4294964208 }
 0x290   : > { %5159 = dma.done.wait (%p3851_p8), [#allocation29], 1088  }
 0x291   : > { %5161 = vsyncadd (%p3851_p8), [#allocation29], 4294966208 }
 0x292   : > { %5163 = dma.done.wait (%p3851_p8), [#allocation32], 32  }
 0x293   : > { %5165 = vsyncadd (%p3851_p8), [#allocation32], 4294967264 }
 0x294   : > { %5167 = dma.done.wait (%p3851_p8), [#allocation35], 1040  }
 0x295   : > { %5169 = vsyncadd (%p3851_p8), [#allocation35], 4294966256 }
 0x296   : > { %5171 = dma.done.wait (%p3851_p8), [#allocation38], 1040  }
 0x297   : > { %5173 = vsyncadd (%p3851_p8), [#allocation38], 4294966256 }
 0x298   : > { %5175 = dma.done.wait (%p3851_p8), [#allocation41], 32  }
 0x299   : > { %5177 = vsyncadd (%p3851_p8), [#allocation41], 4294967264 }
 0x29a   : > { %5179 = dma.done.wait (%p3851_p8), [#allocation44], 1040  }
 0x29b   : > { %5181 = vsyncadd (%p3851_p8), [#allocation44], 4294966256 }
 0x29c   : > { %5183 = dma.done.wait (%p3851_p8), [#allocation47], 1040  }
 0x29d   : > { %5185 = vsyncadd (%p3851_p8), [#allocation47], 4294966256 }
 0x29e   : > { %5187 = dma.done.wait (%p3851_p8), [#allocation50], 32  }
 0x29f   : > { %5189 = vsyncadd (%p3851_p8), [#allocation50], 4294967264 }
 0x2a0   : > { %5191 = dma.done.wait (%p3851_p8), [#allocation53], 1040  }
 0x2a1   : > { %5193 = vsyncadd (%p3851_p8), [#allocation53], 4294966256 }
 0x2a2   : > { %5195 = dma.done.wait (%p3851_p8), [#allocation56], 1040  }
 0x2a3   : > { %5197 = vsyncadd (%p3851_p8), [#allocation56], 4294966256 }
 0x2a4   : > { %5199 = dma.done.wait (%p3851_p8), [#allocation59], 784  }
 0x2a5   : > { %5201 = vsyncadd (%p3851_p8), [#allocation59], 4294966512 }
 0x2a6   : > { %5203 = dma.done.wait (%p3851_p8), [#allocation62], 16  }
 0x2a7   : > { %5205 = vsyncadd (%p3851_p8), [#allocation62], 4294967280  ;;  %v3610_v0 = vld [vmem:[#allocation39 + $0x38] sm:$0xff]  ;;  %v3626_v1 = vld [vmem:[#allocation48 + $0x38] sm:$0xff]  ;;  %v5299_v16 = vmov 0   ;;  %s6274_s17 = sld [smem:[#allocation85_spill]] }
 0x2a8   : > { %2266 = vmatpush.bf16.msra.mxu0 %v3610_v0  ;;  %v3609_v2 = vld [vmem:[#allocation39 + $0x30] sm:$0xff]  ;;  %2471 = vmatpush.bf16.msra.mxu3 %v3626_v1  ;;  %v3625_v3 = vld [vmem:[#allocation48 + $0x30] sm:$0xff]  ;;  %v3608_v4 = vld [vmem:[#allocation39 + $0x28] sm:$0xff]  ;;  %s6275_s24 = sld [smem:[#allocation87_spill]]  ;;  %vm2308_vm0 = vcmask 261120   ;;  %vm2501_vm1 = vcmask 130048  }
 0x2a9   : > { %v3624_v5 = vld [vmem:[#allocation48 + $0x28] sm:$0xff]  ;;  %v3607_v6 = vld [vmem:[#allocation39 + $0x20] sm:$0xff]  ;;  %v3623_v7 = vld [vmem:[#allocation48 + $0x20] sm:$0xff]  ;;  %s6276_s4 = sld [smem:[#allocation89_spill]]  ;;  %p2189_p2 = scmp.lt.s32.totalorder %s5546_s16, 1  ;;  %vm2770_vm2 = vcmask 523264  }
 0x2aa   : > { %v3606_v8 = vld [vmem:[#allocation39 + $0x18] sm:$0xff]  ;;  %v3622_v9 = vld [vmem:[#allocation48 + $0x18] sm:$0xff]  ;;  %v3605_v10 = vld [vmem:[#allocation39 + $0x10] sm:$0xff]  ;;  %s6277_s1 = sld [smem:[#allocation84_spill]] }
 0x2ab   : > { %v3621_v11 = vld [vmem:[#allocation48 + $0x10] sm:$0xff]  ;;  %v3604_v12 = vld [vmem:[#allocation39 + $0x8] sm:$0xff]  ;;  %v3620_v13 = vld [vmem:[#allocation48 + $0x8] sm:$0xff]  ;;  %s6279_s16 = smov (!%p2189_p2, %s5546_s16), 1 }
 0x2ac   : > { %2267 = vmatpush.bf16.msra.mxu0 %v3609_v2  ;;  %2472 = vmatpush.bf16.msra.mxu3 %v3625_v3  ;;  %v3603_v14 = vld [vmem:[#allocation39] sm:$0xff]  ;;  %v3619_v15 = vld [vmem:[#allocation48] sm:$0xff]  ;;  %v3640_v19 = vld [vmem:[#allocation57 + $0x28] sm:$0xff]  ;;  %s3404_s7 = sshll.u32 %s6279_s16, 3 }
 0x2ad   : > { %v3642_v17 = vld [vmem:[#allocation57 + $0x38] sm:$0xff]  ;;  %v3641_v18 = vld [vmem:[#allocation57 + $0x30] sm:$0xff]  ;;  %v3639_v20 = vld [vmem:[#allocation57 + $0x20] sm:$0xff]  ;;  %s2192_s23 = scalar_lea.vmem %s5528_s22, %s3404_s7  ;;  %s2196_s15 = scalar_lea.vmem %s5533_s26, %s3404_s7 }
 0x2ae   : > { %v3638_v21 = vld [vmem:[#allocation57 + $0x18] sm:$0xff]  ;;  %v3637_v22 = vld [vmem:[#allocation57 + $0x10] sm:$0xff]  ;;  %v3636_v24 = vld [vmem:[#allocation57 + $0x8] sm:$0xff]  ;;  %s2200_s12 = scalar_lea.vmem %s5538_s6, %s3404_s7 }
 0x2af   : > { %v3635_v25 = vld [vmem:[#allocation57] sm:$0xff]  ;;  %v3991_v29 = vld [vmem:[#allocation46] ss:$0 sm:$0xff]  ;;  %v3989_v30 = vld [vmem:[#allocation37] ss:$0 sm:$0xff] }
 0x2b0   : > { %2268 = vmatpush.bf16.msra.mxu0 %v3608_v4  ;;  %2473 = vmatpush.bf16.msra.mxu3 %v3624_v5  ;;  %v3618_v32 = vld [vmem:[%s6274_s17 + $0x38] sm:$0xff]  ;;  %v3617_v38 = vld [vmem:[%s6274_s17 + $0x30] sm:$0xff]  ;;  %v3616_v47 = vld [vmem:[%s6274_s17 + $0x28] sm:$0xff] }
 0x2b1   : > { %v3992_v35 = vld [vmem:[#allocation45] ss:$0 sm:$0xff]  ;;  %2394 = vmatpush.bf16.msra.mxu2 %v3618_v32  ;;  %v3990_v39 = vld [vmem:[#allocation36] ss:$0 sm:$0xff]  ;;  %v3615_v52 = vld [vmem:[%s6274_s17 + $0x20] sm:$0xff] }
 0x2b2   : > { %v2307_v54 = vld [vmem:[#allocation2] sm:$0xf]  ;;  %v3634_v55 = vld [vmem:[%s6275_s24 + $0x38] sm:$0xff]  ;;  %v3633_v57 = vld [vmem:[%s6275_s24 + $0x30] sm:$0xff] }
 0x2b3   : > { %v3614_v56 = vld [vmem:[%s6274_s17 + $0x18] sm:$0xff]  ;;  %v3613_v58 = vld [vmem:[%s6274_s17 + $0x10] sm:$0xff]  ;;  %v3632_v59 = vld [vmem:[%s6275_s24 + $0x28] sm:$0xff] }
 0x2b4   : > { %2269 = vmatpush.bf16.msra.mxu0 %v3607_v6  ;;  %2474 = vmatpush.bf16.msra.mxu3 %v3623_v7  ;;  %v3612_v60 = vld [vmem:[%s6274_s17 + $0x8] sm:$0xff]  ;;  %v3611_v61 = vld [vmem:[%s6274_s17] sm:$0xff]  ;;  %v3650_v62 = vld [vmem:[%s6276_s4 + $0x38] sm:$0xff] }
 0x2b5   : > { %2395 = vmatpush.bf16.msra.mxu2 %v3617_v38  ;;  %v2500_v63 = vld [vmem:[#allocation6] sm:$0xf]  ;;  %v3649_v0 = vld [vmem:[%s6276_s4 + $0x30] sm:$0xff]  ;;  %v3630_v4 = vld [vmem:[%s6275_s24 + $0x18] sm:$0xff] }
 0x2b6   : > { %v3648_v1 = vld [vmem:[%s6276_s4 + $0x28] sm:$0xff]  ;;  %v3631_v2 = vld [vmem:[%s6275_s24 + $0x20] sm:$0xff]  ;;  %v3646_v5 = vld [vmem:[%s6276_s4 + $0x18] sm:$0xff] }
 0x2b7   : > { %v3647_v3 = vld [vmem:[%s6276_s4 + $0x20] sm:$0xff]  ;;  %v3629_v7 = vld [vmem:[%s6275_s24 + $0x10] sm:$0xff]  ;;  %v3997_v32 = vld [vmem:[#allocation7] ss:$0 sm:$0xff] }
 0x2b8   : > { %2270 = vmatpush.bf16.msra.mxu0 %v3606_v8  ;;  %2475 = vmatpush.bf16.msra.mxu3 %v3622_v9  ;;  %v3645_v8 = vld [vmem:[%s6276_s4 + $0x10] sm:$0xff]  ;;  %v3628_v9 = vld [vmem:[%s6275_s24 + $0x8] sm:$0xff] }
 0x2b9   : > { %2396 = vmatpush.bf16.msra.mxu2 %v3616_v47 }
 0x2bc   : > { %2271 = vmatpush.bf16.msra.mxu0 %v3605_v10  ;;  %2476 = vmatpush.bf16.msra.mxu3 %v3621_v11  ;;  %v3644_v10 = vld [vmem:[%s6276_s4 + $0x8] sm:$0xff] }
 0x2bd   : > { %2397 = vmatpush.bf16.msra.mxu2 %v3615_v52 }
 0x2c0   : > { %2272 = vmatpush.bf16.msra.mxu0 %v3604_v12  ;;  %2477 = vmatpush.bf16.msra.mxu3 %v3620_v13  ;;  %v3627_v12 = vld [vmem:[%s6275_s24] sm:$0xff] }
 0x2c1   : > { %2398 = vmatpush.bf16.msra.mxu2 %v3614_v56  ;;  %v3643_v13 = vld [vmem:[%s6276_s4] sm:$0xff] }
 0x2c4   : > { %2273 = vmatpush.bf16.msra.mxu0 %v3603_v14  ;;  %2478 = vmatpush.bf16.msra.mxu3 %v3619_v15 }
 0x2c5   : > { %2399 = vmatpush.bf16.msra.mxu2 %v3613_v58 }
 0x2c7   : > { %2274 = vmatmul.bf16.vlgmr.msra.gmra.mxu0 %v5299_v16  ;;  %2479 = vmatmul.bf16.vlgmr.msra.gmra.mxu3 %v5299_v16 }
 0x2c8   : > { %2664 = vmatpush.bf16.msrb.mxu0 %v3642_v17 }
 0x2c9   : > { %2400 = vmatpush.bf16.msra.mxu2 %v3612_v60 }
 0x2cc   : > { %2665 = vmatpush.bf16.msrb.mxu0 %v3641_v18  ;;  %v3994_v18 = vld [vmem:[#allocation54] ss:$0 sm:$0xff] }
 0x2cd   : > { %2401 = vmatpush.bf16.msra.mxu2 %v3611_v61 }
 0x2d0   : > { %2666 = vmatpush.bf16.msrb.mxu0 %v3640_v19 }
 0x2d1   : > { %2757 = vmatpush.bf16.msrb.mxu2 %v3650_v62 }
 0x2d4   : > { %2667 = vmatpush.bf16.msrb.mxu0 %v3639_v20 }
 0x2d5   : > { %2758 = vmatpush.bf16.msrb.mxu2 %v3649_v0 }
 0x2d7   : > { %2279 = vmatmul.bf16.gmra.mxu0 %v5299_v16 }
 0x2d8   : > { %2668 = vmatpush.bf16.msrb.mxu0 %v3638_v21 }
 0x2d9   : > { %2759 = vmatpush.bf16.msrb.mxu2 %v3648_v1 }
 0x2dc   : > { %2669 = vmatpush.bf16.msrb.mxu0 %v3637_v22 }
 0x2dd   : > { %2760 = vmatpush.bf16.msrb.mxu2 %v3647_v3 }
 0x2e0   : > { %2670 = vmatpush.bf16.msrb.mxu0 %v3636_v24 }
 0x2e1   : > { %2761 = vmatpush.bf16.msrb.mxu2 %v3646_v5 }
 0x2e4   : > { %2671 = vmatpush.bf16.msrb.mxu0 %v3635_v25  ;;  %v3995_v25 = vld [vmem:[%s6277_s1] ss:$0 sm:$0xff] }
 0x2e5   : > { %2762 = vmatpush.bf16.msrb.mxu2 %v3645_v8 }
 0x2e7   : > { %2672 = vmatmul.bf16.vlgmr.msrb.gmra.mxu0 %v5299_v16  ;;  %v3993_v16 = vld [vmem:[#allocation55] ss:$0 sm:$0xff] }
 0x2e9   : > { %2763 = vmatpush.bf16.msrb.mxu2 %v3644_v10 }
 0x2ed   : > { %2764 = vmatpush.bf16.msrb.mxu2 %v3643_v13 }
 0x344   : > { %v2275_v23 = vpop.f32.mrf.mxu0 }
 0x345   : > { %v2289_v42 = vmul.f32 %v3989_v30, %v2275_v23 }
 0x347   : > { %v2297_v50 = vadd.f32 %v3990_v39, %v2289_v42 }
 0x34a   : > { %v2480_v27 = vpop.f32.mrf.mxu3 }
 0x34b   : > { %v2489_v34 = vmul.f32 %v3991_v29, %v2480_v27 }
 0x34c   : > { %v2277_v26 = vpop.f32.mrf.mxu0 }
 0x34d   : > { %v2290_v40 = vmul.f32 %v3989_v30, %v2277_v26  ;;  %v2495_v45 = vadd.f32 %v3992_v35, %v2489_v34 }
 0x34f   : > { %v2298_v48 = vadd.f32 %v3990_v39, %v2290_v40 }
 0x351   : > { %v2305_v53 = vpack.c.bf16 %v2298_v48, %v2297_v50 }
 0x352   : > { %v2482_v31 = vpop.f32.mrf.mxu3 }
 0x353   : > { %v2490_v37 = vmul.f32 %v3991_v29, %v2482_v31 }
 0x354   : > { %v2280_v28 = vpop.f32.mrf.mxu0 }
 0x355   : > { %v2291_v33 = vmul.f32 %v3989_v30, %v2280_v28  ;;  %v2496_v46 = vadd.f32 %v3992_v35, %v2490_v37  ;;  %v3996_v28 = vld [vmem:[#allocation4] ss:$0 sm:$0xff] }
 0x357   : > { %v2299_v43 = vadd.f32 %v3990_v39, %v2291_v33  ;;  %v2499_v51 = vpack.c.bf16 %v2496_v46, %v2495_v45 }
 0x35c   : > { %v2282_v36 = vpop.f32.mrf.mxu0 }
 0x35d   : > { %v2292_v41 = vmul.f32 %v3989_v30, %v2282_v36 }
 0x35f   : > { %v2300_v44 = vadd.f32 %v3990_v39, %v2292_v41 }
 0x361   : > { %v2306_v49 = vpack.c.bf16 %v2300_v44, %v2299_v43 }
 0x363   : > { %2318 = vmatpush.bf16.msra.mxu1 %v2306_v49 }
 0x364   : > { %v2673_v6 = vpop.f32.mrf.mxu0 }
 0x365   : > { %v2681_v17 = vmul.f32 %v3993_v16, %v2673_v6 }
 0x367   : > { %2319 = vmatpush.bf16.msra.mxu1 %v2305_v53  ;;  %v2686_v20 = vadd.f32 %v3994_v18, %v2681_v17 }
 0x369   : > { %v2688_v21 = vpack.c.bf16 %v2686_v20, %v2686_v20 }
 0x36a   : > { %3439 = vmatmul.msk.bf16.vlgmr.msra.gmra.mxu1 %vm2308_vm0, %v2307_v54 }
 0x36b   : > { %2512 = vmatpush.bf16.msrb.mxu1 %v2499_v51 }
 0x36c   : > { %v2675_v11 = vpop.f32.mrf.mxu0 }
 0x36f   : > { %2587 = vmatpush.bf16.msra.mxu1 %v3634_v55 }
 0x373   : > { %2588 = vmatpush.bf16.msra.mxu1 %v3633_v57 }
 0x377   : > { %2589 = vmatpush.bf16.msra.mxu1 %v3632_v59 }
 0x37a   : > { %3504 = vmatmul.msk.bf16.vlgmr.msrb.gmra.mxu1 %vm2501_vm1, %v2500_v63 }
 0x37b   : > { %2590 = vmatpush.bf16.msra.mxu1 %v3631_v2 }
 0x37f   : > { %2591 = vmatpush.bf16.msra.mxu1 %v3630_v4 }
 0x383   : > { %2592 = vmatpush.bf16.msra.mxu1 %v3629_v7 }
 0x387   : > { %2593 = vmatpush.bf16.msra.mxu1 %v3628_v9 }
 0x38b   : > { %2594 = vmatpush.bf16.msra.mxu1 %v3627_v12 }
 0x3e7   : > { %v2321_v14 = vpop.f32.mrf.mxu1 }
 0x3e8   : > { %v2325_v15 = vpack.c.bf16 %v2321_v14, %v2321_v14 }
 0x3ea   : > { %2402 = vmatmul.bf16.vlgmr.msra.gmra.mxu2 %v2325_v15 }
 0x3ef   : > { %v2323_v19 = vpop.f32.mrf.mxu1 }
 0x3f7   : > { %v2514_v22 = vpop.f32.mrf.mxu1 }
 0x3f8   : > { %v2518_v23 = vpack.c.bf16 %v2514_v22, %v2514_v22 }
 0x3fa   : > { %2595 = vmatmul.bf16.vlgmr.msra.gmra.mxu1 %v2518_v23  ;;  %2765 = vmatmul.bf16.vlgmr.msrb.gmra.mxu2 %v2688_v21 }
 0x3ff   : > { %v2516_v24 = vpop.f32.mrf.mxu1 }
 0x46d   : > { %v2403_v26 = vpop.f32.mrf.mxu2 }
 0x46e   : > { %v2404_v27 = vadd.f32 %v3995_v25, %v2403_v26 }
 0x470   : > { %2771 = vst.msk [vmem:[%s2192_s23] sm:$0xff] %vm2770_vm2, %v2404_v27 }
 0x475   : > { %v2405_v29 = vpop.f32.mrf.mxu2 }
 0x477   : > { %v2596_v30 = vpop.f32.mrf.mxu1 }
 0x478   : > { %v2597_v31 = vadd.f32 %v3996_v28, %v2596_v30 }
 0x47a   : > { %2772 = vst.msk [vmem:[%s2196_s15] sm:$0xff] %vm2770_vm2, %v2597_v31 }
 0x47d   : > { %v2766_v33 = vpop.f32.mrf.mxu2 }
 0x47e   : > { %v2767_v34 = vadd.f32 %v3997_v32, %v2766_v33 }
 0x47f   : > { %v2598_v35 = vpop.f32.mrf.mxu1 }
 0x480   : > { %2773 = vst.msk [vmem:[%s2200_s12] sm:$0xff] %vm2770_vm2, %v2767_v34 }
 0x485   : > { %v2768_v36 = vpop.f32.mrf.mxu2 }
 0x486 PF: > { %s139_s0 = sadd.s32 1, %s5208_s0  }
 0x487   : > { %p136_p3 = scmp.ge.s32.totalorder %s139_s0, 4  }
 0x489   :  { %138 = sbr.rel (!%p136_p3) target bundleno = 105 (0x69), region = 492 }
 0x48e   :  { %2821 = vsyncpa [#allocation3], 1 }
 0x48f   :  { %2823 = vsyncpa [#allocation3 + $0x1], 1 }
 0x490   :  { %2824 = vsyncpa [#allocation5], 1 }
 0x491   :  { %2825 = vsyncpa [#allocation8], 1 }
 0x492   :  { %2826 = vsyncpa [#allocation11], 1 }
 0x493   :  { %2827 = vsyncpa [#allocation14], 1 }
 0x494   :  { %2828 = vsyncpa [#allocation17], 1 }
 0x495   :  { %2829 = vsyncpa [#allocation20], 1 }
 0x496   :  { %2830 = vsyncpa [#allocation23], 1 }
 0x497   :  { %2831 = vsyncpa [#allocation26], 1 }
 0x498   :  { %2832 = vsyncpa [#allocation29], 1 }
 0x499   :  { %2833 = vsyncpa [#allocation32], 1 }
 0x49a   :  { %2834 = vsyncpa [#allocation35], 1 }
 0x49b   :  { %2835 = vsyncpa [#allocation38], 1 }
 0x49c   :  { %2836 = vsyncpa [#allocation41], 1 }
 0x49d   :  { %2837 = vsyncpa [#allocation44], 1 }
 0x49e   :  { %2838 = vsyncpa [#allocation47], 1 }
 0x49f   :  { %2839 = vsyncpa [#allocation50], 1 }
 0x4a0   :  { %2840 = vsyncpa [#allocation53], 1 }
 0x4a1   :  { %2841 = vsyncpa [#allocation56], 1 }
 0x4a2   :  { %2842 = vsyncpa [#allocation59], 1 }
 0x4a3   :  { %2843 = vsyncpa [#allocation62], 1 }

</bundles_post_ra>
